<compile_context>
chip_gen: v5e
topology: v5e:2x2
jax: 0.10.0
libtpu: 0.0.40
codegen_flags: <defaults>
</compile_context>

<pallas_src>
import functools

import jax
import jax.numpy as jnp
from jax.experimental import pallas as pl
from jax.experimental.pallas import tpu as pltpu


_OUT_PAD = 8  # output rows/cols padded 7 -> 8 (sublane aligned)


# ---------------------------------------------------------------------------
# Host-side (plain JAX, jit-fused) precompute.
# ---------------------------------------------------------------------------
def _interp_matrix_1d(start, bin_size, dim, out_size, sample_num):
    """A[n, o, g]: mean over `sample_num` samples of 1-D bilinear weights."""
    o = jnp.arange(out_size, dtype=jnp.float32)[None, :, None]     # (1,OUT,1)
    s = jnp.arange(sample_num, dtype=jnp.float32)[None, None, :]   # (1,1,S)
    start = start[:, None, None]
    bin_size = bin_size[:, None, None]
    pos = start + o * bin_size + (s + 0.5) * (bin_size / float(sample_num))
    valid = (pos >= -1.0) & (pos <= float(dim))
    pos_c = jnp.clip(pos, 0.0, float(dim) - 1.0)
    g = jnp.arange(dim, dtype=jnp.float32)                          # (dim,)
    w = jnp.maximum(0.0, 1.0 - jnp.abs(pos_c[..., None] - g))       # (N,OUT,S,dim)
    w = w * valid[..., None].astype(jnp.float32)
    return w.sum(axis=2) / float(sample_num)                        # (N,OUT,dim)


def _roi_slots(bidx, B, R, npad):
    """Assign each ROI a padded slot so every R-ROI tile is single-image.

    Returns:
      slot:   (N,) int32, padded slot of each ORIGINAL roi.
      tile_b: (npad//R,) int32, batch image id of each ROI tile.
    """
    N = bidx.shape[0]
    order = jnp.argsort(bidx)                      # sorted roi -> original roi
    sorted_b = bidx[order]
    counts = jnp.bincount(bidx, length=B).astype(jnp.int32)        # per image
    padded = ((counts + R - 1) // R) * R            # per-image padded group
    group_start = jnp.concatenate(
        [jnp.zeros((1,), jnp.int32), jnp.cumsum(padded)[:-1].astype(jnp.int32)])
    roi_start = jnp.concatenate(
        [jnp.zeros((1,), jnp.int32), jnp.cumsum(counts)[:-1].astype(jnp.int32)])
    rank = jnp.arange(N, dtype=jnp.int32) - roi_start[sorted_b]
    slot_sorted = group_start[sorted_b] + rank
    slot = jnp.zeros((N,), jnp.int32).at[order].set(slot_sorted)

    num_tiles = npad // R
    tile_start = jnp.arange(num_tiles, dtype=jnp.int32) * R
    group_end = group_start + padded
    tile_b = jnp.sum((tile_start[:, None] >= group_end[None, :]).astype(jnp.int32),
                     axis=1)
    tile_b = jnp.clip(tile_b, 0, B - 1).astype(jnp.int32)           # empty tiles
    return slot, tile_b


def _level_operands(feat, rois, slot, stride, out_size, sample_num, npad, cdt):
    """Build (A_y stacked, A_x padded, per-image feature matrix) for one level."""
    B, C, H, W = feat.shape
    scale = 1.0 / float(stride)

    x1 = rois[:, 1] * scale
    y1 = rois[:, 2] * scale
    x2 = (rois[:, 3] + 1.0) * scale          # mmdet-v1 "+1" convention
    y2 = (rois[:, 4] + 1.0) * scale
    bin_w = jnp.maximum(x2 - x1, 0.0) / float(out_size)
    bin_h = jnp.maximum(y2 - y1, 0.0) / float(out_size)

    ay = _interp_matrix_1d(y1, bin_h, H, out_size, sample_num)      # (N,OUT,H)
    ax = _interp_matrix_1d(x1, bin_w, W, out_size, sample_num)      # (N,OUT,W)

    # Scatter into per-image-contiguous padded slots; pad OUT 7 -> 8 (zero row).
    ay_p = jnp.zeros((npad, _OUT_PAD, H), jnp.float32).at[slot, :out_size, :].set(ay)
    ax_p = jnp.zeros((npad, _OUT_PAD, W), jnp.float32).at[slot, :out_size, :].set(ax)

    ay_s = ay_p.reshape(npad * _OUT_PAD, H).astype(cdt)             # (npad*8, H)
    ax_p = ax_p.astype(cdt)                                         # (npad, 8, W)
    # Per-image feature as (B, H, C*W) so stage 1 is a single 2-D matmul.
    ft = feat.transpose(0, 2, 1, 3).reshape(B, H, C * W).astype(cdt)
    return ay_s, ax_p, ft


# ---------------------------------------------------------------------------
# The Pallas kernel: one ROI tile (R ROIs) x all pyramid levels per grid step.
# ---------------------------------------------------------------------------
def _make_kernel(num_levels, roi_tile, out_size, channels, widths,
                 compute_dtype, out_dtype):
    del out_size  # OUT is padded to _OUT_PAD everywhere inside the kernel.
    R, OP, C = roi_tile, _OUT_PAD, channels

    def kernel(*refs):
        # refs = [tile_batch (SMEM, only used by the index_maps),
        #         (ay, ax, ft) per level, out_ref, per-level VMEM scratch]
        out_ref = refs[1 + 3 * num_levels]                 # (R*8, L*C*8)
        for lvl in range(num_levels):
            ay_ref = refs[1 + 3 * lvl + 0]                 # (R*8, H)
            ax_ref = refs[1 + 3 * lvl + 1]                 # (R, 8, W)
            ft_ref = refs[1 + 3 * lvl + 2]                 # (1, H, C*W)
            sc_ref = refs[2 + 3 * num_levels + lvl]        # (R, C*8, W)
            W = widths[lvl]

            # Stage 1: y-interpolation for the whole ROI tile and all channels
            # as ONE MXU matmul with f32 accumulation (K = H, not B*H).
            tmp = jnp.dot(ay_ref[...], ft_ref[0],
                          preferred_element_type=jnp.float32)       # (R*8, C*W)
            # Single full-width cast (hoisted out of the channel loop); the row
            # split (R*8) -> (R, 8) is a free sublane-group reshape.
            tmp = tmp.astype(compute_dtype).reshape(R, OP, C * W)

            # Relayout (channel: lanes -> sublanes) through VMEM scratch so the
            # x-interpolation below is ONE batched contraction over all
            # channels instead of C tiny matmuls + C masked stores.
            # TODO(synk): for production C (e.g. 256) turn this into a
            #             channel-tiled grid axis instead of C slice-copies.
            for c in range(C):
                sc_ref[:, c * OP:(c + 1) * OP, :] = tmp[:, :, c * W:(c + 1) * W]

            # Stage 2: x-interpolation, batched over the R ROIs, all channels
            # at once.  Result dims: (roi, out_x, (channel, out_y)).
            res = jax.lax.dot_general(
                ax_ref[...], sc_ref[...],
                dimension_numbers=(((2,), (2,)), ((0,), (0,))),
                preferred_element_type=jnp.float32)                 # (R, 8, C*8)

            # One lane-contiguous store per level into the 2-D output slab.
            out_ref[:, lvl * C * OP:(lvl + 1) * C * OP] = (
                res.reshape(R * OP, C * OP).astype(out_dtype))

    return kernel


def _default_roi_tile():
    """v6e/v7x: M = R*8 = 256 fills the MXU; v5e (128-wide MXU): M = 128."""
    try:
        kind = jax.devices()[0].device_kind.lower()
    except Exception:
        return 16
    if "v6" in kind or "v7" in kind:
        return 32
    return 16


@functools.partial(
    jax.jit,
    static_argnames=("out_size", "sample_num", "featmap_strides",
                     "compute_dtype", "out_dtype", "roi_tile"))
def pan_multi_roi_align(feats, rois, *, out_size, sample_num, featmap_strides,
                        compute_dtype, out_dtype, roi_tile):
    feats = tuple(feats)
    L = len(feats)
    B, C = feats[0].shape[0], feats[0].shape[1]
    N = rois.shape[0]
    R = int(roi_tile)
    OUT = int(out_size)
    OP = _OUT_PAD
    cdt = compute_dtype

    # Static upper bound on padded slots (each image's group padded to R).
    npad = max(R, -(-(N + B * (R - 1)) // R) * R)
    num_tiles = npad // R

    bidx = jnp.clip(rois[:, 0].astype(jnp.int32), 0, B - 1)
    slot, tile_b = _roi_slots(bidx, B, R, npad)

    in_specs, operands, widths, scratch_shapes = [], [], [], []
    in_block_bytes = 0
    dsz = jnp.dtype(cdt).itemsize
    for feat, stride in zip(feats, featmap_strides):
        Bf, Cf, H, W = feat.shape
        assert Bf == B and Cf == C
        ay_s, ax_p, ft = _level_operands(feat, rois, slot, stride, OUT,
                                         sample_num, npad, cdt)
        in_specs += [
            pl.BlockSpec((R * OP, H), lambda i, tb: (i, 0)),
            pl.BlockSpec((R, OP, W), lambda i, tb: (i, 0, 0)),
            # Per-ROI-tile image selection via scalar-prefetched batch ids:
            pl.BlockSpec((1, H, C * W), lambda i, tb: (tb[i], 0, 0)),
        ]
        operands += [ay_s, ax_p, ft]
        widths.append(W)
        scratch_shapes.append(pltpu.VMEM((R, C * OP, W), cdt))
        in_block_bytes += (R * OP * H + R * OP * W + H * C * W) * dsz

    # vmem_limit derived from the actual blocks (double-buffered) + scratch.
    out_dsz = jnp.dtype(out_dtype).itemsize
    out_block_bytes = R * OP * L * C * OP * out_dsz
    scratch_bytes = sum(R * C * OP * w * dsz for w in widths)
    vmem_need = 2 * (in_block_bytes + out_block_bytes) + scratch_bytes + (8 << 20)
    try:
        vmem_cap = int(pltpu.get_tpu_info().vmem_capacity_bytes)
    except Exception:
        vmem_cap = 64 << 20  # conservative (v7x physical VMEM)
    vmem_limit = int(min(max(vmem_need, 32 << 20), int(vmem_cap * 0.85)))

    kernel = _make_kernel(L, R, OUT, C, tuple(widths), cdt, out_dtype)

    out = pl.pallas_call(
        kernel,
        out_shape=jax.ShapeDtypeStruct((npad * OP, L * C * OP), out_dtype),
        grid_spec=pltpu.PrefetchScalarGridSpec(
            num_scalar_prefetch=1,
            grid=(num_tiles,),
            in_specs=in_specs,
            out_specs=pl.BlockSpec((R * OP, L * C * OP), lambda i, tb: (i, 0)),
            scratch_shapes=scratch_shapes),
        compiler_params=pltpu.CompilerParams(
            # ROI tiles are independent -> lets megacore shard the tile axis.
            dimension_semantics=("parallel",),
            vmem_limit_bytes=vmem_limit),
    )(tile_b, *operands)

    # HBM-side layout plumbing (cheap XLA ops): rows = (slot, out_x),
    # lanes = (level, channel, out_y)  ->  (N, L*C, 7, 7) in original ROI order.
    out = out.reshape(npad, OP, L, C, OP).transpose(0, 2, 3, 4, 1)
    out = out.reshape(npad, L * C, OP, OP)[:, :, :OUT, :OUT]
    return out[slot]


class PANMultiRoIExtractor:
    """JAX/Pallas re-implementation of mmdet's PANMultiRoIExtractor forward."""

    def __init__(self, roi_layer, out_channels, featmap_strides,
                 compute_dtype=jnp.bfloat16, out_dtype=jnp.float32,
                 roi_tile=None):
        assert roi_layer["type"] == "RoIAlign"
        self.out_size = int(roi_layer["out_size"])
        self.sample_num = int(roi_layer.get("sample_num", 2))
        # TODO(synk): adaptive sampling (sample_num=0) not supported.
        assert self.sample_num > 0
        self.out_channels = out_channels
        self.featmap_strides = tuple(featmap_strides)
        self.len_strides = len(self.featmap_strides)
        self.compute_dtype = compute_dtype
        self.out_dtype = out_dtype
        self.roi_tile = int(roi_tile) if roi_tile is not None else _default_roi_tile()

    @property
    def num_inputs(self):
        return len(self.featmap_strides)

    def init_weights(self):
        pass  # module has no learnable parameters

    def __call__(self, feats, rois):
        assert len(feats) == self.len_strides
        for f in feats:
            assert f.shape[1] == self.out_channels
        return pan_multi_roi_align(
            tuple(feats), rois,
            out_size=self.out_size, sample_num=self.sample_num,
            featmap_strides=self.featmap_strides,
            compute_dtype=self.compute_dtype, out_dtype=self.out_dtype,
            roi_tile=self.roi_tile)


# ---------------------------------------------------------------------------
# Pure-JAX reference (same RoIAlign math, per-ROI einsum) for correctness.
# ---------------------------------------------------------------------------
def _ref_roi_align_level(feat, rois, out_size, sample_num, spatial_scale):
    B, C, H, W = feat.shape
    S = float(sample_num)

    def one(roi):
        b = roi[0].astype(jnp.int32)
        x1 = roi[1] * spatial_scale
        y1 = roi[2] * spatial_scale
        x2 = (roi[3] + 1.0) * spatial_scale
        y2 = (roi[4] + 1.0) * spatial_scale
        bin_w = jnp.maximum(x2 - x1, 0.0) / out_size
        bin_h = jnp.maximum(y2 - y1, 0.0) / out_size

        def A(start, bin_size, dim):
            o = jnp.arange(out_size, dtype=jnp.float32)[:, None]
            s = jnp.arange(sample_num, dtype=jnp.float32)[None, :]
            pos = start + o * bin_size + (s + 0.5) * (bin_size / S)
            valid = ((pos >= -1.0) & (pos <= dim)).astype(jnp.float32)
            pc = jnp.clip(pos, 0.0, dim - 1.0)
            g = jnp.arange(dim, dtype=jnp.float32)
            w = jnp.maximum(0.0, 1.0 - jnp.abs(pc[..., None] - g))
            w = w * valid[..., None]
            return w.sum(axis=1) / S

        ay = A(y1, bin_h, H)
        ax = A(x1, bin_w, W)
        return jnp.einsum("oh,chw,pw->cop", ay, feat[b], ax)

    return jax.vmap(one)(rois)


if __name__ == "__main__":
    B, C = 2, 4
    featmap_strides = (4, 8, 16)
    img_size = 64.0
    N = 6
    out_size = 7

    key = jax.random.PRNGKey(0)
    kf, kb, kxy, kwh = jax.random.split(key, 4)

    # Feature pyramid: (2,4,16,16), (2,4,8,8), (2,4,4,4)
    feats = []
    fkeys = jax.random.split(kf, len(featmap_strides))
    for fk, s in zip(fkeys, featmap_strides):
        hs = int(img_size // s)
        feats.append(jax.random.normal(fk, (B, C, hs, hs), dtype=jnp.float32))
    feats = tuple(feats)

    b_idx = jax.random.randint(kb, (N,), 0, B).astype(jnp.float32)
    xy1 = jax.random.uniform(kxy, (N, 2), minval=0.0, maxval=img_size * 0.6)
    wh = jax.random.uniform(kwh, (N, 2), minval=4.0, maxval=img_size * 0.4)
    xy2 = jnp.minimum(xy1 + wh, img_size - 1.0)
    rois = jnp.concatenate(
        [b_idx[:, None], xy1[:, 0:1], xy1[:, 1:2], xy2[:, 0:1], xy2[:, 1:2]],
        axis=1).astype(jnp.float32)

    ref = jnp.concatenate(
        [_ref_roi_align_level(f, rois, out_size, 2, 1.0 / float(s))
         for f, s in zip(feats, featmap_strides)], axis=1)
    ref = jax.block_until_ready(ref)
    expected_shape = (N, C * len(featmap_strides), out_size, out_size)

    # 1) f32 compute path: tight numerical check against the reference.
    ext_f32 = PANMultiRoIExtractor(
        roi_layer=dict(type="RoIAlign", out_size=out_size, sample_num=2),
        out_channels=C, featmap_strides=featmap_strides,
        compute_dtype=jnp.float32)
    out_f32 = jax.block_until_ready(ext_f32(feats, rois))
    assert out_f32.shape == expected_shape, (out_f32.shape, expected_shape)
    assert bool(jnp.all(jnp.isfinite(out_f32)))
    assert jnp.allclose(out_f32, ref, atol=1e-4, rtol=1e-4), float(
        jnp.max(jnp.abs(out_f32 - ref)))

    # 2) bf16 compute path (default; MXU-native on v6e/v7x): looser tolerance.
    ext_bf16 = PANMultiRoIExtractor(
        roi_layer=dict(type="RoIAlign", out_size=out_size, sample_num=2),
        out_channels=C, featmap_strides=featmap_strides)
    out_bf16 = jax.block_until_ready(ext_bf16(feats, rois))
    assert out_bf16.shape == expected_shape, (out_bf16.shape, expected_shape)
    assert bool(jnp.all(jnp.isfinite(out_bf16)))
    assert jnp.allclose(out_bf16, ref, atol=5e-2, rtol=5e-2), float(
        jnp.max(jnp.abs(out_bf16 - ref)))

    print("KERNEL_OK")
</pallas_src>

<mosaic_0001>
module attributes {stable_mosaic.version = 11 : i64} {
  func.func @kernel(%arg0: i32, %arg1: memref<3xi32, #tpu.memory_space<smem>>, %arg2: memref<128x16xf32, #tpu.memory_space<vmem>>, %arg3: memref<16x8x16xf32, #tpu.memory_space<vmem>>, %arg4: memref<1x16x64xf32, #tpu.memory_space<vmem>>, %arg5: memref<128x8xf32, #tpu.memory_space<vmem>>, %arg6: memref<16x8x8xf32, #tpu.memory_space<vmem>>, %arg7: memref<1x8x32xf32, #tpu.memory_space<vmem>>, %arg8: memref<128x4xf32, #tpu.memory_space<vmem>>, %arg9: memref<16x8x4xf32, #tpu.memory_space<vmem>>, %arg10: memref<1x4x16xf32, #tpu.memory_space<vmem>>, %arg11: memref<128x96xf32, #tpu.memory_space<vmem>>, %arg12: memref<16x32x16xf32, #tpu.memory_space<vmem>>, %arg13: memref<16x32x8xf32, #tpu.memory_space<vmem>>, %arg14: memref<16x32x4xf32, #tpu.memory_space<vmem>>) attributes {dimension_semantics = [#tpu.dimension_semantics<parallel>], iteration_bounds = array<i64: 3>, scalar_prefetch = 1 : i64, scratch_operands = 3 : i64, tpu.core_type = #tpu.core_type<tc>, window_params = [{transform_indices = @transform_0, window_bounds = array<i64: 128, 16>}, {transform_indices = @transform_1, window_bounds = array<i64: 16, 8, 16>}, {transform_indices = @transform_2, window_bounds = array<i64: 1, 16, 64>}, {transform_indices = @transform_3, window_bounds = array<i64: 128, 8>}, {transform_indices = @transform_4, window_bounds = array<i64: 16, 8, 8>}, {transform_indices = @transform_5, window_bounds = array<i64: 1, 8, 32>}, {transform_indices = @transform_6, window_bounds = array<i64: 128, 4>}, {transform_indices = @transform_7, window_bounds = array<i64: 16, 8, 4>}, {transform_indices = @transform_8, window_bounds = array<i64: 1, 4, 16>}, {transform_indices = @transform_9, window_bounds = array<i64: 128, 96>}]} {
    %c0 = arith.constant 0 : index
    %c0_0 = arith.constant 0 : index
    %0 = vector.load %arg2[%c0, %c0_0] : memref<128x16xf32, #tpu.memory_space<vmem>>, vector<128x16xf32>
    %c0_1 = arith.constant 0 : index
    %c0_2 = arith.constant 0 : index
    %c0_3 = arith.constant 0 : index
    %1 = vector.load %arg4[%c0_1, %c0_2, %c0_3] : memref<1x16x64xf32, #tpu.memory_space<vmem>>, vector<1x16x64xf32>
    %2 = vector.shape_cast %1 : vector<1x16x64xf32> to vector<16x64xf32>
    %cst = arith.constant dense<0.000000e+00> : vector<128x64xf32>
    %3 = tpu.matmul %0, %2, %cst {dimension_numbers = #tpu.dot_dimension_numbers<[1], [0], [0], [1], [0, 0, 1, 1], [], []>} : vector<128x16xf32>, vector<16x64xf32>, vector<128x64xf32> -> vector<128x64xf32>
    %4 = vector.shape_cast %3 : vector<128x64xf32> to vector<16x8x64xf32>
    %5 = vector.extract_strided_slice %4 {offsets = [0, 0, 0], sizes = [16, 8, 16], strides = [1, 1, 1]} : vector<16x8x64xf32> to vector<16x8x16xf32>
    %c0_4 = arith.constant 0 : index
    %c0_5 = arith.constant 0 : index
    %c0_6 = arith.constant 0 : index
    %6 = vector.load %arg12[%c0_4, %c0_5, %c0_6] : memref<16x32x16xf32, #tpu.memory_space<vmem>>, vector<16x8x16xf32>
    tpu.vector_store %arg12[%c0_4, %c0_5, %c0_6], %5 {strides = array<i32>} : memref<16x32x16xf32, #tpu.memory_space<vmem>>, vector<16x8x16xf32>,
    %7 = vector.extract_strided_slice %4 {offsets = [0, 0, 16], sizes = [16, 8, 16], strides = [1, 1, 1]} : vector<16x8x64xf32> to vector<16x8x16xf32>
    %c0_7 = arith.constant 0 : index
    %c8 = arith.constant 8 : index
    %c0_8 = arith.constant 0 : index
    %8 = vector.load %arg12[%c0_7, %c8, %c0_8] : memref<16x32x16xf32, #tpu.memory_space<vmem>>, vector<16x8x16xf32>
    tpu.vector_store %arg12[%c0_7, %c8, %c0_8], %7 {strides = array<i32>} : memref<16x32x16xf32, #tpu.memory_space<vmem>>, vector<16x8x16xf32>,
    %9 = vector.extract_strided_slice %4 {offsets = [0, 0, 32], sizes = [16, 8, 16], strides = [1, 1, 1]} : vector<16x8x64xf32> to vector<16x8x16xf32>
    %c0_9 = arith.constant 0 : index
    %c16 = arith.constant 16 : index
    %c0_10 = arith.constant 0 : index
    %10 = vector.load %arg12[%c0_9, %c16, %c0_10] : memref<16x32x16xf32, #tpu.memory_space<vmem>>, vector<16x8x16xf32>
    tpu.vector_store %arg12[%c0_9, %c16, %c0_10], %9 {strides = array<i32>} : memref<16x32x16xf32, #tpu.memory_space<vmem>>, vector<16x8x16xf32>,
    %11 = vector.extract_strided_slice %4 {offsets = [0, 0, 48], sizes = [16, 8, 16], strides = [1, 1, 1]} : vector<16x8x64xf32> to vector<16x8x16xf32>
    %c0_11 = arith.constant 0 : index
    %c24 = arith.constant 24 : index
    %c0_12 = arith.constant 0 : index
    %12 = vector.load %arg12[%c0_11, %c24, %c0_12] : memref<16x32x16xf32, #tpu.memory_space<vmem>>, vector<16x8x16xf32>
    tpu.vector_store %arg12[%c0_11, %c24, %c0_12], %11 {strides = array<i32>} : memref<16x32x16xf32, #tpu.memory_space<vmem>>, vector<16x8x16xf32>,
    %c0_13 = arith.constant 0 : index
    %c0_14 = arith.constant 0 : index
    %c0_15 = arith.constant 0 : index
    %13 = vector.load %arg3[%c0_13, %c0_14, %c0_15] : memref<16x8x16xf32, #tpu.memory_space<vmem>>, vector<16x8x16xf32>
    %c0_16 = arith.constant 0 : index
    %c0_17 = arith.constant 0 : index
    %c0_18 = arith.constant 0 : index
    %14 = vector.load %arg12[%c0_16, %c0_17, %c0_18] : memref<16x32x16xf32, #tpu.memory_space<vmem>>, vector<16x32x16xf32>
    %cst_19 = arith.constant dense<0.000000e+00> : vector<16x8x32xf32>
    %15 = tpu.matmul %13, %14, %cst_19 {dimension_numbers = #tpu.dot_dimension_numbers<[2], [2], [1], [1], [0, 0, 0, 1, 1, 1], [0], [0]>} : vector<16x8x16xf32>, vector<16x32x16xf32>, vector<16x8x32xf32> -> vector<16x8x32xf32>
    %16 = vector.shape_cast %15 : vector<16x8x32xf32> to vector<128x32xf32>
    %c0_20 = arith.constant 0 : index
    %c0_21 = arith.constant 0 : index
    %17 = vector.load %arg11[%c0_20, %c0_21] : memref<128x96xf32, #tpu.memory_space<vmem>>, vector<128x32xf32>
    tpu.vector_store %arg11[%c0_20, %c0_21], %16 {strides = array<i32>} : memref<128x96xf32, #tpu.memory_space<vmem>>, vector<128x32xf32>,
    %c0_22 = arith.constant 0 : index
    %c0_23 = arith.constant 0 : index
    %18 = vector.load %arg5[%c0_22, %c0_23] : memref<128x8xf32, #tpu.memory_space<vmem>>, vector<128x8xf32>
    %c0_24 = arith.constant 0 : index
    %c0_25 = arith.constant 0 : index
    %c0_26 = arith.constant 0 : index
    %19 = vector.load %arg7[%c0_24, %c0_25, %c0_26] : memref<1x8x32xf32, #tpu.memory_space<vmem>>, vector<1x8x32xf32>
    %20 = vector.shape_cast %19 : vector<1x8x32xf32> to vector<8x32xf32>
    %cst_27 = arith.constant dense<0.000000e+00> : vector<128x32xf32>
    %21 = tpu.matmul %18, %20, %cst_27 {dimension_numbers = #tpu.dot_dimension_numbers<[1], [0], [0], [1], [0, 0, 1, 1], [], []>} : vector<128x8xf32>, vector<8x32xf32>, vector<128x32xf32> -> vector<128x32xf32>
    %22 = vector.shape_cast %21 : vector<128x32xf32> to vector<16x8x32xf32>
    %23 = vector.extract_strided_slice %22 {offsets = [0, 0, 0], sizes = [16, 8, 8], strides = [1, 1, 1]} : vector<16x8x32xf32> to vector<16x8x8xf32>
    %c0_28 = arith.constant 0 : index
    %c0_29 = arith.constant 0 : index
    %c0_30 = arith.constant 0 : index
    %24 = vector.load %arg13[%c0_28, %c0_29, %c0_30] : memref<16x32x8xf32, #tpu.memory_space<vmem>>, vector<16x8x8xf32>
    tpu.vector_store %arg13[%c0_28, %c0_29, %c0_30], %23 {strides = array<i32>} : memref<16x32x8xf32, #tpu.memory_space<vmem>>, vector<16x8x8xf32>,
    %25 = vector.extract_strided_slice %22 {offsets = [0, 0, 8], sizes = [16, 8, 8], strides = [1, 1, 1]} : vector<16x8x32xf32> to vector<16x8x8xf32>
    %c0_31 = arith.constant 0 : index
    %c8_32 = arith.constant 8 : index
    %c0_33 = arith.constant 0 : index
    %26 = vector.load %arg13[%c0_31, %c8_32, %c0_33] : memref<16x32x8xf32, #tpu.memory_space<vmem>>, vector<16x8x8xf32>
    tpu.vector_store %arg13[%c0_31, %c8_32, %c0_33], %25 {strides = array<i32>} : memref<16x32x8xf32, #tpu.memory_space<vmem>>, vector<16x8x8xf32>,
    %27 = vector.extract_strided_slice %22 {offsets = [0, 0, 16], sizes = [16, 8, 8], strides = [1, 1, 1]} : vector<16x8x32xf32> to vector<16x8x8xf32>
    %c0_34 = arith.constant 0 : index
    %c16_35 = arith.constant 16 : index
    %c0_36 = arith.constant 0 : index
    %28 = vector.load %arg13[%c0_34, %c16_35, %c0_36] : memref<16x32x8xf32, #tpu.memory_space<vmem>>, vector<16x8x8xf32>
    tpu.vector_store %arg13[%c0_34, %c16_35, %c0_36], %27 {strides = array<i32>} : memref<16x32x8xf32, #tpu.memory_space<vmem>>, vector<16x8x8xf32>,
    %29 = vector.extract_strided_slice %22 {offsets = [0, 0, 24], sizes = [16, 8, 8], strides = [1, 1, 1]} : vector<16x8x32xf32> to vector<16x8x8xf32>
    %c0_37 = arith.constant 0 : index
    %c24_38 = arith.constant 24 : index
    %c0_39 = arith.constant 0 : index
    %30 = vector.load %arg13[%c0_37, %c24_38, %c0_39] : memref<16x32x8xf32, #tpu.memory_space<vmem>>, vector<16x8x8xf32>
    tpu.vector_store %arg13[%c0_37, %c24_38, %c0_39], %29 {strides = array<i32>} : memref<16x32x8xf32, #tpu.memory_space<vmem>>, vector<16x8x8xf32>,
    %c0_40 = arith.constant 0 : index
    %c0_41 = arith.constant 0 : index
    %c0_42 = arith.constant 0 : index
    %31 = vector.load %arg6[%c0_40, %c0_41, %c0_42] : memref<16x8x8xf32, #tpu.memory_space<vmem>>, vector<16x8x8xf32>
    %c0_43 = arith.constant 0 : index
    %c0_44 = arith.constant 0 : index
    %c0_45 = arith.constant 0 : index
    %32 = vector.load %arg13[%c0_43, %c0_44, %c0_45] : memref<16x32x8xf32, #tpu.memory_space<vmem>>, vector<16x32x8xf32>
    %cst_46 = arith.constant dense<0.000000e+00> : vector<16x8x32xf32>
    %33 = tpu.matmul %31, %32, %cst_46 {dimension_numbers = #tpu.dot_dimension_numbers<[2], [2], [1], [1], [0, 0, 0, 1, 1, 1], [0], [0]>} : vector<16x8x8xf32>, vector<16x32x8xf32>, vector<16x8x32xf32> -> vector<16x8x32xf32>
    %34 = vector.shape_cast %33 : vector<16x8x32xf32> to vector<128x32xf32>
    %c0_47 = arith.constant 0 : index
    %c32 = arith.constant 32 : index
    %35 = vector.load %arg11[%c0_47, %c32] : memref<128x96xf32, #tpu.memory_space<vmem>>, vector<128x32xf32>
    tpu.vector_store %arg11[%c0_47, %c32], %34 {strides = array<i32>} : memref<128x96xf32, #tpu.memory_space<vmem>>, vector<128x32xf32>,
    %c0_48 = arith.constant 0 : index
    %c0_49 = arith.constant 0 : index
    %36 = vector.load %arg8[%c0_48, %c0_49] : memref<128x4xf32, #tpu.memory_space<vmem>>, vector<128x4xf32>
    %c0_50 = arith.constant 0 : index
    %c0_51 = arith.constant 0 : index
    %c0_52 = arith.constant 0 : index
    %37 = vector.load %arg10[%c0_50, %c0_51, %c0_52] : memref<1x4x16xf32, #tpu.memory_space<vmem>>, vector<1x4x16xf32>
    %38 = vector.shape_cast %37 : vector<1x4x16xf32> to vector<4x16xf32>
    %cst_53 = arith.constant dense<0.000000e+00> : vector<128x16xf32>
    %39 = tpu.matmul %36, %38, %cst_53 {dimension_numbers = #tpu.dot_dimension_numbers<[1], [0], [0], [1], [0, 0, 1, 1], [], []>} : vector<128x4xf32>, vector<4x16xf32>, vector<128x16xf32> -> vector<128x16xf32>
    %40 = vector.shape_cast %39 : vector<128x16xf32> to vector<16x8x16xf32>
    %41 = vector.extract_strided_slice %40 {offsets = [0, 0, 0], sizes = [16, 8, 4], strides = [1, 1, 1]} : vector<16x8x16xf32> to vector<16x8x4xf32>
    %c0_54 = arith.constant 0 : index
    %c0_55 = arith.constant 0 : index
    %c0_56 = arith.constant 0 : index
    %42 = vector.load %arg14[%c0_54, %c0_55, %c0_56] : memref<16x32x4xf32, #tpu.memory_space<vmem>>, vector<16x8x4xf32>
    tpu.vector_store %arg14[%c0_54, %c0_55, %c0_56], %41 {strides = array<i32>} : memref<16x32x4xf32, #tpu.memory_space<vmem>>, vector<16x8x4xf32>,
    %43 = vector.extract_strided_slice %40 {offsets = [0, 0, 4], sizes = [16, 8, 4], strides = [1, 1, 1]} : vector<16x8x16xf32> to vector<16x8x4xf32>
    %c0_57 = arith.constant 0 : index
    %c8_58 = arith.constant 8 : index
    %c0_59 = arith.constant 0 : index
    %44 = vector.load %arg14[%c0_57, %c8_58, %c0_59] : memref<16x32x4xf32, #tpu.memory_space<vmem>>, vector<16x8x4xf32>
    tpu.vector_store %arg14[%c0_57, %c8_58, %c0_59], %43 {strides = array<i32>} : memref<16x32x4xf32, #tpu.memory_space<vmem>>, vector<16x8x4xf32>,
    %45 = vector.extract_strided_slice %40 {offsets = [0, 0, 8], sizes = [16, 8, 4], strides = [1, 1, 1]} : vector<16x8x16xf32> to vector<16x8x4xf32>
    %c0_60 = arith.constant 0 : index
    %c16_61 = arith.constant 16 : index
    %c0_62 = arith.constant 0 : index
    %46 = vector.load %arg14[%c0_60, %c16_61, %c0_62] : memref<16x32x4xf32, #tpu.memory_space<vmem>>, vector<16x8x4xf32>
    tpu.vector_store %arg14[%c0_60, %c16_61, %c0_62], %45 {strides = array<i32>} : memref<16x32x4xf32, #tpu.memory_space<vmem>>, vector<16x8x4xf32>,
    %47 = vector.extract_strided_slice %40 {offsets = [0, 0, 12], sizes = [16, 8, 4], strides = [1, 1, 1]} : vector<16x8x16xf32> to vector<16x8x4xf32>
    %c0_63 = arith.constant 0 : index
    %c24_64 = arith.constant 24 : index
    %c0_65 = arith.constant 0 : index
    %48 = vector.load %arg14[%c0_63, %c24_64, %c0_65] : memref<16x32x4xf32, #tpu.memory_space<vmem>>, vector<16x8x4xf32>
    tpu.vector_store %arg14[%c0_63, %c24_64, %c0_65], %47 {strides = array<i32>} : memref<16x32x4xf32, #tpu.memory_space<vmem>>, vector<16x8x4xf32>,
    %c0_66 = arith.constant 0 : index
    %c0_67 = arith.constant 0 : index
    %c0_68 = arith.constant 0 : index
    %49 = vector.load %arg9[%c0_66, %c0_67, %c0_68] : memref<16x8x4xf32, #tpu.memory_space<vmem>>, vector<16x8x4xf32>
    %c0_69 = arith.constant 0 : index
    %c0_70 = arith.constant 0 : index
    %c0_71 = arith.constant 0 : index
    %50 = vector.load %arg14[%c0_69, %c0_70, %c0_71] : memref<16x32x4xf32, #tpu.memory_space<vmem>>, vector<16x32x4xf32>
    %cst_72 = arith.constant dense<0.000000e+00> : vector<16x8x32xf32>
    %51 = tpu.matmul %49, %50, %cst_72 {dimension_numbers = #tpu.dot_dimension_numbers<[2], [2], [1], [1], [0, 0, 0, 1, 1, 1], [0], [0]>} : vector<16x8x4xf32>, vector<16x32x4xf32>, vector<16x8x32xf32> -> vector<16x8x32xf32>
    %52 = vector.shape_cast %51 : vector<16x8x32xf32> to vector<128x32xf32>
    %c0_73 = arith.constant 0 : index
    %c64 = arith.constant 64 : index
    %53 = vector.load %arg11[%c0_73, %c64] : memref<128x96xf32, #tpu.memory_space<vmem>>, vector<128x32xf32>
    tpu.vector_store %arg11[%c0_73, %c64], %52 {strides = array<i32>} : memref<128x96xf32, #tpu.memory_space<vmem>>, vector<128x32xf32>,
    return
  }
  func.func @transform_0(%arg0: i32, %arg1: memref<3xi32, #tpu.memory_space<smem>>) -> (i32, i32) {
    %c0_i32 = arith.constant 0 : i32
    %c0_i32_0 = arith.constant 0 : i32
    return %arg0, %c0_i32 : i32, i32
  }
  func.func @transform_1(%arg0: i32, %arg1: memref<3xi32, #tpu.memory_space<smem>>) -> (i32, i32, i32) {
    %c0_i32 = arith.constant 0 : i32
    %c0_i32_0 = arith.constant 0 : i32
    %c0_i32_1 = arith.constant 0 : i32
    return %arg0, %c0_i32, %c0_i32_0 : i32, i32, i32
  }
  func.func @transform_2(%arg0: i32, %arg1: memref<3xi32, #tpu.memory_space<smem>>) -> (i32, i32, i32) {
    %0 = arith.index_cast %arg0 : i32 to index
    %1 = memref.load %arg1[%0] : memref<3xi32, #tpu.memory_space<smem>>
    %c0_i32 = arith.constant 0 : i32
    %c0_i32_0 = arith.constant 0 : i32
    %c0_i32_1 = arith.constant 0 : i32
    return %1, %c0_i32, %c0_i32_0 : i32, i32, i32
  }
  func.func @transform_3(%arg0: i32, %arg1: memref<3xi32, #tpu.memory_space<smem>>) -> (i32, i32) {
    %c0_i32 = arith.constant 0 : i32
    %c0_i32_0 = arith.constant 0 : i32
    return %arg0, %c0_i32 : i32, i32
  }
  func.func @transform_4(%arg0: i32, %arg1: memref<3xi32, #tpu.memory_space<smem>>) -> (i32, i32, i32) {
    %c0_i32 = arith.constant 0 : i32
    %c0_i32_0 = arith.constant 0 : i32
    %c0_i32_1 = arith.constant 0 : i32
    return %arg0, %c0_i32, %c0_i32_0 : i32, i32, i32
  }
  func.func @transform_5(%arg0: i32, %arg1: memref<3xi32, #tpu.memory_space<smem>>) -> (i32, i32, i32) {
    %0 = arith.index_cast %arg0 : i32 to index
    %1 = memref.load %arg1[%0] : memref<3xi32, #tpu.memory_space<smem>>
    %c0_i32 = arith.constant 0 : i32
    %c0_i32_0 = arith.constant 0 : i32
    %c0_i32_1 = arith.constant 0 : i32
    return %1, %c0_i32, %c0_i32_0 : i32, i32, i32
  }
  func.func @transform_6(%arg0: i32, %arg1: memref<3xi32, #tpu.memory_space<smem>>) -> (i32, i32) {
    %c0_i32 = arith.constant 0 : i32
    %c0_i32_0 = arith.constant 0 : i32
    return %arg0, %c0_i32 : i32, i32
  }
  func.func @transform_7(%arg0: i32, %arg1: memref<3xi32, #tpu.memory_space<smem>>) -> (i32, i32, i32) {
    %c0_i32 = arith.constant 0 : i32
    %c0_i32_0 = arith.constant 0 : i32
    %c0_i32_1 = arith.constant 0 : i32
    return %arg0, %c0_i32, %c0_i32_0 : i32, i32, i32
  }
  func.func @transform_8(%arg0: i32, %arg1: memref<3xi32, #tpu.memory_space<smem>>) -> (i32, i32, i32) {
    %0 = arith.index_cast %arg0 : i32 to index
    %1 = memref.load %arg1[%0] : memref<3xi32, #tpu.memory_space<smem>>
    %c0_i32 = arith.constant 0 : i32
    %c0_i32_0 = arith.constant 0 : i32
    %c0_i32_1 = arith.constant 0 : i32
    return %1, %c0_i32, %c0_i32_0 : i32, i32, i32
  }
  func.func @transform_9(%arg0: i32, %arg1: memref<3xi32, #tpu.memory_space<smem>>) -> (i32, i32) {
    %c0_i32 = arith.constant 0 : i32
    %c0_i32_0 = arith.constant 0 : i32
    return %arg0, %c0_i32 : i32, i32
  }
}

</mosaic_0001>

<bundles_post_ra>
// kernel: pan_multi_roi_align.1
= control target key start
LH: loop header
LB: loop body
LE: loop exit
PB: predicated region body
PF: predicated region fallthrough
CT: control target
= control target key end

     0   :  { %s4206_s16 = smov [#allocation6]   ;;  %s5300_s0 = inlined_call_operand.vmem [shape: s32[3], index: 0, kind: input, shape index: {}]   ;;  %s5301_s1 = inlined_call_operand.vmem [shape: f32[384,16], index: 1, kind: input, shape index: {}]   ;;  %s5302_s2 = inlined_call_operand.vmem [shape: f32[48,8,16], index: 2, kind: input, shape index: {}]   ;;  %s5303_s3 = inlined_call_operand.vmem [shape: f32[2,16,64], index: 3, kind: input, shape index: {}]   ;;  %s5304_s4 = inlined_call_operand.vmem [shape: f32[384,8], index: 4, kind: input, shape index: {}]   ;;  %s5305_s5 = inlined_call_operand.vmem [shape: f32[48,8,8], index: 5, kind: input, shape index: {}]   ;;  %s5306_s6 = inlined_call_operand.vmem [shape: f32[2,8,32], index: 6, kind: input, shape index: {}]   ;;  %s5307_s7 = inlined_call_operand.vmem [shape: f32[384,4], index: 7, kind: input, shape index: {}]   ;;  %s5308_s8 = inlined_call_operand.vmem [shape: f32[48,8,4], index: 8, kind: input, shape index: {}]   ;;  %s5309_s9 = inlined_call_operand.vmem [shape: f32[2,4,16], index: 9, kind: input, shape index: {}]   ;;  %s5310_s10 = inlined_call_operand.vmem [shape: f32[384,96], index: 10, kind: output, shape index: {}]  }
   0x1   :  { %s16_s15 = sshll.u32 %s5300_s0, 4  ;;  %s17_s15 = int_to_ptr.vmem [resolvable:$true] %s16_s15 }
   0x2   :  { %19 = dma.vmem_to_smem %s17_s15, 16, %s4206_s16, [#allocation5] }
   0x3   :  { %4200 = dma.done.wait [#allocation5], 16 }
   0x4   :  { %4201 = vsyncadd [#allocation5], 4294967280 }
   0x5   :  { %22 = sfence }
   0x6   :  { %s4274_s17 = smov 0  }
   0x7 LB: > { %s4280_s18 = sadd.s32 4294967295, %s4204_s17   ;;  %p3855_p0 = scmp.ge.s32.totalorder %s4204_s17, 1  ;;  %s4204_s17 = sphi %s4274_s17, %s28_s17  }
   0x8   : > { %p392_p1 = scmp.lt.s32.totalorder %s4204_s17, 4 }
   0xa   : > { %p393_p2 = pnand %p3855_p0, %p392_p1 }
   0xb   : > { %s481_s0 = sld [smem:[#allocation6 + %s4280_s18]] (!%p393_p2)  ;;  %s3856_s19 = sshll.u32 (!%p393_p2), %s4280_s18, 4 }
   0xc   : > { %396 = sbr.rel (%p393_p2) target bundleno = 1426 (0x592), region = 56  ;;  %p470_p3 = scmp.lt.s32.totalorder (!%p393_p2), %s3856_s19, 47 }
   0xd   : > { %s4207_s28 = smov (!%p393_p2), 112   ;;  %s4208_s29 = smov (!%p393_p2), 80  }
   0xe   : > { %s4209_s30 = smov (!%p393_p2), 96   ;;  %s500_s14 = sld [smem:[#allocation6 + %s4280_s18]] (!%p393_p2) }
   0xf   : > { %s4211_s11 = smov (!%p393_p2), 104  }
  0x11   : > { %s5312_s19 = smov (!%p470_p3, %s3856_s19), 47  ;;  %p482_p4 = scmp.lt.s32.totalorder %s481_s0, 1  ;;  %vm548_vm0 = vcmask 130048   ;;  %vm1560_vm1 = vcmask 64512   ;;  %vm1526_vm2 = vcmask 261120   ;;  %vm2685_vm3 = vcmask 1043456  }
  0x12   : > { %s4286_s20 = sshll.u32 %s5312_s19, 3  ;;  %vm2636_vm4 = vcmask 31744   ;;  %vm2602_vm5 = vcmask 523520   ;;  %vm3682_vm6 = vcmask 785920  }
  0x13   : > { %s5314_s0 = smov (!%p482_p4, %s481_s0), 1  ;;  %s4292_s24 = scalar_lea.vmem %s5301_s1, %s4286_s20 }
  0x14   : > { %s4165_s21 = sshll.u32 %s5314_s0, 4  ;;  %v530_v2 = vld [vmem:[%s4292_s24] sm:$0xff]  ;;  %v531_v3 = vld [vmem:[%s4292_s24 + $0x8] sm:$0xff]  ;;  %v532_v4 = vld [vmem:[%s4292_s24 + $0x10] sm:$0xff]  ;;  %s4395_s13 = scalar_lea.vmem %s5302_s2, %s4286_s20 }
  0x15   : > { %s486_s27 = scalar_lea.vmem %s5303_s3, %s4165_s21  ;;  %v533_v5 = vld [vmem:[%s4292_s24 + $0x18] sm:$0xff]  ;;  %v534_v6 = vld [vmem:[%s4292_s24 + $0x20] sm:$0xff]  ;;  %v535_v7 = vld [vmem:[%s4292_s24 + $0x28] sm:$0xff]  ;;  %p501_p5 = scmp.lt.s32.totalorder %s500_s14, 1 }
  0x16   : > { %v547_v0 = vld [vmem:[%s486_s27 + $0x8] sm:$0xff]  ;;  %v546_v1 = vld [vmem:[%s486_s27] sm:$0xff]  ;;  %v536_v8 = vld [vmem:[%s4292_s24 + $0x30] sm:$0xff]  ;;  %s4457_s23 = scalar_lea.vmem %s5304_s4, %s4286_s20  ;;  %s4488_s27 = scalar_lea.vmem %s5310_s10, %s4286_s20 }
  0x17   : > { %611 = vmatpush.msra.mxu0 %v547_v0  ;;  %v537_v9 = vld [vmem:[%s4292_s24 + $0x38] sm:$0xff]  ;;  %v538_v10 = vld [vmem:[%s4292_s24 + $0x40] sm:$0xff]  ;;  %v539_v11 = vld [vmem:[%s4292_s24 + $0x48] sm:$0xff]  ;;  %s5316_s14 = smov (!%p501_p5, %s500_s14), 1  ;;  %s4770_s22 = scalar_lea.vmem %s5307_s7, %s4286_s20 }
  0x18   : > { %v540_v12 = vld [vmem:[%s4292_s24 + $0x50] sm:$0xff]  ;;  %v541_v13 = vld [vmem:[%s4292_s24 + $0x58] sm:$0xff]  ;;  %v542_v14 = vld [vmem:[%s4292_s24 + $0x60] sm:$0xff]  ;;  %s3866_s15 = sshll.u32 %s5316_s14, 3 }
  0x19   : > { %612 = vmatpush.msra.mxu0 %v546_v1  ;;  %v543_v15 = vld [vmem:[%s4292_s24 + $0x68] sm:$0xff]  ;;  %v544_v30 = vld [vmem:[%s4292_s24 + $0x70] sm:$0xff]  ;;  %v890_v50 = vld [vmem:[%s4395_s13 + $0x20] sm:$0xff]  ;;  %s504_s19 = scalar_lea.vmem %s5306_s6, %s3866_s15  ;;  %s4626_s15 = scalar_lea.vmem %s5305_s5, %s4286_s20 }
  0x1a   : > { %3874 = vmatmul.msk.f32.vlgmr.msra.gmra.mxu0 %vm548_vm0, %v530_v2  ;;  %v887_v42 = vld [vmem:[%s4395_s13 + $0x8] sm:$0xff]  ;;  %v893_v55 = vld [vmem:[%s4395_s13 + $0x38] sm:$0xff]  ;;  %v896_v1 = vld [vmem:[%s4395_s13 + $0x50] sm:$0xff] }
  0x22   : > { %3875 = vmatmul.msk.f32.gmra.mxu0 %vm548_vm0, %v531_v3 }
  0x2a   : > { %3876 = vmatmul.msk.f32.gmra.mxu0 %vm548_vm0, %v532_v4 }
  0x32   : > { %3877 = vmatmul.msk.f32.gmra.mxu0 %vm548_vm0, %v533_v5 }
  0x3a   : > { %3878 = vmatmul.msk.f32.gmra.mxu0 %vm548_vm0, %v534_v6 }
  0x42   : > { %3879 = vmatmul.msk.f32.gmra.mxu0 %vm548_vm0, %v535_v7 }
  0x4a   : > { %3880 = vmatmul.msk.f32.gmra.mxu0 %vm548_vm0, %v536_v8 }
  0x52   : > { %3881 = vmatmul.msk.f32.gmra.mxu0 %vm548_vm0, %v537_v9 }
  0x5a   : > { %3882 = vmatmul.msk.f32.gmra.mxu0 %vm548_vm0, %v538_v10 }
  0x62   : > { %3883 = vmatmul.msk.f32.gmra.mxu0 %vm548_vm0, %v539_v11 }
  0x6a   : > { %3884 = vmatmul.msk.f32.gmra.mxu0 %vm548_vm0, %v540_v12 }
  0x72   : > { %3885 = vmatmul.msk.f32.gmra.mxu0 %vm548_vm0, %v541_v13 }
  0x7a   : > { %3886 = vmatmul.msk.f32.gmra.mxu0 %vm548_vm0, %v542_v14  ;;  %v1559_v14 = vld [vmem:[%s504_s19] sm:$0xff] }
  0x82   : > { %3887 = vmatmul.msk.f32.gmra.mxu0 %vm548_vm0, %v543_v15 }
  0x8a   : > { %3888 = vmatmul.msk.f32.gmra.mxu0 %vm548_vm0, %v544_v30  ;;  %v1543_v30 = vld [vmem:[%s4457_s23] sm:$0xff] }
  0x97   : > { %v4325_v16 = vpop.f32.mrf.mxu0 }
  0x98   : > { %662 = vst.msk [vmem:[#allocation2] sm:$0xff] %vm548_vm0, %v4325_v16 }
  0x9f   : > { %v617_v17 = vpop.f32.mrf.mxu0 }
  0xa0   : > { %663 = vst.msk [vmem:[#allocation2 + $0x20] sm:$0xff] %vm548_vm0, %v617_v17  ;;  %696 = vrot.lane.b32.xlu1 %v617_v17, %s4207_s28  ;;  %824 = vrot.lane.b32.xlu0 %v617_v17, %s4208_s29 }
  0xa7   : > { %v4332_v18 = vpop.f32.mrf.mxu0  ;;  %v906_v41 = vld [vmem:[#allocation2 + $0x20] sm:$0xff] }
  0xa8   : > { %664 = vst.msk [vmem:[#allocation2 + $0x40] sm:$0xff] %vm548_vm0, %v4332_v18  ;;  %760 = vrot.lane.b32.xlu0 %v617_v17, %s4209_s30  ;;  %v899_v17 = vld [vmem:[%s4395_s13 + $0x68] sm:$0xff] }
  0xaf   : > { %v4337_v19 = vpop.f32.mrf.mxu0 }
  0xb0   : > { %665 = vst.msk [vmem:[#allocation2 + $0x60] sm:$0xff] %vm548_vm0, %v4337_v19 }
  0xb7   : > { %v626_v20 = vpop.f32.mrf.mxu0 }
  0xb8   : > { %666 = vst.msk [vmem:[#allocation2 + $0x80] sm:$0xff] %vm548_vm0, %v626_v20  ;;  %766 = vrot.lane.b32.xlu2 %v626_v20, %s4209_s30  ;;  %830 = vrot.lane.b32.xlu1 %v626_v20, %s4208_s29 }
  0xbf   : > { %v629_v21 = vpop.f32.mrf.mxu0  ;;  %v918_v46 = vld [vmem:[#allocation2 + $0x80] sm:$0xff] }
  0xc0   : > { %667 = vst.msk [vmem:[#allocation2 + $0xa0] sm:$0xff] %vm548_vm0, %v629_v21  ;;  %702 = vrot.lane.b32.xlu2 %v626_v20, %s4207_s28 }
  0xc7   : > { %v4346_v22 = vpop.f32.mrf.mxu0 }
  0xc8   : > { %668 = vst.msk [vmem:[#allocation2 + $0xc0] sm:$0xff] %vm548_vm0, %v4346_v22 }
  0xcf   : > { %v635_v23 = vpop.f32.mrf.mxu0 }
  0xd0   : > { %669 = vst.msk [vmem:[#allocation2 + $0xe0] sm:$0xff] %vm548_vm0, %v635_v23  ;;  %708 = vrot.lane.b32.xlu2 %v635_v23, %s4207_s28  ;;  %772 = vrot.lane.b32.xlu1 %v635_v23, %s4209_s30 }
  0xd1   : > { %836 = vrot.lane.b32.xlu0 %v635_v23, %s4208_s29 }
  0xd7   : > { %v638_v24 = vpop.f32.mrf.mxu0  ;;  %v930_v54 = vld [vmem:[#allocation2 + $0xe0] sm:$0xff] }
  0xd8   : > { %670 = vst.msk [vmem:[#allocation2 + $0x100] sm:$0xff] %vm548_vm0, %v638_v24 }
  0xdf   : > { %v4355_v25 = vpop.f32.mrf.mxu0 }
  0xe0   : > { %671 = vst.msk [vmem:[#allocation2 + $0x120] sm:$0xff] %vm548_vm0, %v4355_v25 }
  0xe7   : > { %v644_v26 = vpop.f32.mrf.mxu0 }
  0xe8   : > { %672 = vst.msk [vmem:[#allocation2 + $0x140] sm:$0xff] %vm548_vm0, %v644_v26  ;;  %714 = vrot.lane.b32.xlu2 %v644_v26, %s4207_s28  ;;  %778 = vrot.lane.b32.xlu1 %v644_v26, %s4209_s30 }
  0xe9   : > { %842 = vrot.lane.b32.xlu0 %v644_v26, %s4208_s29  ;;  %v922_v26 = vld [vmem:[#allocation2 + $0xa0] sm:$0xff] }
  0xef   : > { %v647_v27 = vpop.f32.mrf.mxu0  ;;  %v942_v0 = vld [vmem:[#allocation2 + $0x140] sm:$0xff] }
  0xf0   : > { %673 = vst.msk [vmem:[#allocation2 + $0x160] sm:$0xff] %vm548_vm0, %v647_v27 }
  0xf7   : > { %v4364_v28 = vpop.f32.mrf.mxu0 }
  0xf8   : > { %674 = vst.msk [vmem:[#allocation2 + $0x180] sm:$0xff] %vm548_vm0, %v4364_v28 }
  0xff   : > { %v653_v29 = vpop.f32.mrf.mxu0 }
 0x100   : > { %675 = vst.msk [vmem:[#allocation2 + $0x1a0] sm:$0xff] %vm548_vm0, %v653_v29  ;;  %720 = vrot.lane.b32.xlu2 %v653_v29, %s4207_s28  ;;  %784 = vrot.lane.b32.xlu1 %v653_v29, %s4209_s30 }
 0x101   : > { %848 = vrot.lane.b32.xlu0 %v653_v29, %s4208_s29  ;;  %v891_v29 = vld [vmem:[%s4395_s13 + $0x28] sm:$0xff] }
 0x107   : > { %v954_v15 = vld [vmem:[#allocation2 + $0x1a0] sm:$0xff] }
 0x108   : > { %704 = vrot.lane.b32.xlu2 %v629_v21, %s4207_s28  ;;  %768 = vrot.lane.b32.xlu1 %v629_v21, %s4209_s30 }
 0x109   : > { %832 = vrot.lane.b32.xlu0 %v629_v21, %s4208_s29 }
 0x110   : > { %710 = vrot.lane.b32.xlu2 %v638_v24, %s4207_s28  ;;  %774 = vrot.lane.b32.xlu1 %v638_v24, %s4209_s30 }
 0x111   : > { %838 = vrot.lane.b32.xlu0 %v638_v24, %s4208_s29  ;;  %v656_v24 = vpop.f32.mrf.mxu0 }
 0x112   : > { %v697_v31 = vpop.permute.xlu1 %696  ;;  %v825_v32 = vpop.permute.xlu0 %824  ;;  %676 = vst.msk [vmem:[#allocation2 + $0x1c0] sm:$0xff] %vm548_vm0, %v656_v24 }
 0x113   : > { %743 = vst.msk [vmem:[#allocation2 + $0x28] sm:$0xff] %vm548_vm0, %v697_v31  ;;  %v767_v33 = vpop.permute.xlu2 %766 }
 0x114   : > { %871 = vst.msk [vmem:[#allocation2 + $0x38] sm:$0xff] %vm548_vm0, %v825_v32 }
 0x115   : > { %810 = vst.msk [vmem:[#allocation2 + $0x90] sm:$0xff] %vm548_vm0, %v767_v33  ;;  %v1544_v33 = vld [vmem:[%s4457_s23 + $0x8] sm:$0xff] }
 0x118   : > { %716 = vrot.lane.b32.xlu2 %v647_v27, %s4207_s28  ;;  %780 = vrot.lane.b32.xlu1 %v647_v27, %s4209_s30 }
 0x119   : > { %844 = vrot.lane.b32.xlu0 %v647_v27, %s4208_s29 }
 0x11a   : > { %v761_v34 = vpop.permute.xlu0 %760  ;;  %v907_v38 = vld [vmem:[#allocation2 + $0x28] sm:$0xff] }
 0x11b   : > { %807 = vst.msk [vmem:[#allocation2 + $0x30] sm:$0xff] %vm548_vm0, %v761_v34  ;;  %v703_v35 = vpop.permute.xlu2 %702  ;;  %v909_v36 = vld [vmem:[#allocation2 + $0x38] sm:$0xff]  ;;  %v934_v34 = vld [vmem:[#allocation2 + $0x100] sm:$0xff] }
 0x11c   : > { %746 = vst.msk [vmem:[#allocation2 + $0x88] sm:$0xff] %vm548_vm0, %v703_v35  ;;  %3895 = vmatpush.xpose.msk.msra.mxu2 %vm548_vm0, %v909_v36  ;;  %v920_v44 = vld [vmem:[#allocation2 + $0x90] sm:$0xff] }
 0x120   : > { %786 = vrot.lane.b32.xlu1 %v656_v24, %s4209_s30  ;;  %722 = vrot.lane.b32.xlu2 %v656_v24, %s4207_s28 }
 0x121   : > { %850 = vrot.lane.b32.xlu0 %v656_v24, %s4208_s29 }
 0x122   : > { %v908_v37 = vld [vmem:[#allocation2 + $0x30] sm:$0xff] }
 0x123   : > { %3896 = vmatpush.xpose.msk.msra.mxu2 %vm548_vm0, %v908_v37  ;;  %v919_v45 = vld [vmem:[#allocation2 + $0x88] sm:$0xff]  ;;  %v1545_v37 = vld [vmem:[%s4457_s23 + $0x10] sm:$0xff] }
 0x127   : > { %3897 = vmatpush.xpose.msk.msra.mxu2 %vm548_vm0, %v907_v38 }
 0x12a   : > { %v831_v39 = vpop.permute.xlu1 %830  ;;  %v709_v40 = vpop.permute.xlu2 %708 }
 0x12b   : > { %874 = vst.msk [vmem:[#allocation2 + $0x98] sm:$0xff] %vm548_vm0, %v831_v39  ;;  %3898 = vmatpush.xpose.msk.msra.mxu2 %vm548_vm0, %v906_v41  ;;  %v946_v39 = vld [vmem:[#allocation2 + $0x160] sm:$0xff] }
 0x12c   : > { %749 = vst.msk [vmem:[#allocation2 + $0xe8] sm:$0xff] %vm548_vm0, %v709_v40  ;;  %v1546_v40 = vld [vmem:[%s4457_s23 + $0x18] sm:$0xff]  ;;  %v1547_v41 = vld [vmem:[%s4457_s23 + $0x20] sm:$0xff] }
 0x12e   : > { %3899 = vmatmul.msk.f32.vlgmr.msra.gmra.mxu2 %vm548_vm0, %v887_v42  ;;  %v1548_v42 = vld [vmem:[%s4457_s23 + $0x28] sm:$0xff] }
 0x132   : > { %v921_v43 = vld [vmem:[#allocation2 + $0x98] sm:$0xff] }
 0x133   : > { %3910 = vmatpush.xpose.msk.msrb.mxu2 %vm548_vm0, %v921_v43  ;;  %v931_v53 = vld [vmem:[#allocation2 + $0xe8] sm:$0xff]  ;;  %v1549_v43 = vld [vmem:[%s4457_s23 + $0x30] sm:$0xff] }
 0x137   : > { %3911 = vmatpush.xpose.msk.msrb.mxu2 %vm548_vm0, %v920_v44 }
 0x13b   : > { %3912 = vmatpush.xpose.msk.msrb.mxu2 %vm548_vm0, %v919_v45  ;;  %v1550_v45 = vld [vmem:[%s4457_s23 + $0x38] sm:$0xff] }
 0x13f   : > { %3913 = vmatpush.xpose.msk.msrb.mxu2 %vm548_vm0, %v918_v46 }
 0x142   : > { %v773_v47 = vpop.permute.xlu1 %772  ;;  %v715_v48 = vpop.permute.xlu2 %714  ;;  %3914 = vmatmul.msk.f32.vlgmr.msrb.gmra.mxu2 %vm548_vm0, %v890_v50  ;;  %v1553_v50 = vld [vmem:[%s4457_s23 + $0x50] sm:$0xff] }
 0x143   : > { %813 = vst.msk [vmem:[#allocation2 + $0xf0] sm:$0xff] %vm548_vm0, %v773_v47  ;;  %v837_v49 = vpop.permute.xlu0 %836  ;;  %v1551_v47 = vld [vmem:[%s4457_s23 + $0x40] sm:$0xff] }
 0x144   : > { %877 = vst.msk [vmem:[#allocation2 + $0xf8] sm:$0xff] %vm548_vm0, %v837_v49 }
 0x145   : > { %752 = vst.msk [vmem:[#allocation2 + $0x148] sm:$0xff] %vm548_vm0, %v715_v48  ;;  %v1552_v48 = vld [vmem:[%s4457_s23 + $0x48] sm:$0xff] }
 0x14a   : > { %v932_v52 = vld [vmem:[#allocation2 + $0xf0] sm:$0xff] }
 0x14b   : > { %v933_v51 = vld [vmem:[#allocation2 + $0xf8] sm:$0xff] }
 0x14c   : > { %3925 = vmatpush.xpose.msk.msra.mxu2 %vm548_vm0, %v933_v51  ;;  %v943_v63 = vld [vmem:[#allocation2 + $0x148] sm:$0xff]  ;;  %v1554_v51 = vld [vmem:[%s4457_s23 + $0x58] sm:$0xff] }
 0x150   : > { %3926 = vmatpush.xpose.msk.msra.mxu2 %vm548_vm0, %v932_v52  ;;  %v1555_v52 = vld [vmem:[%s4457_s23 + $0x60] sm:$0xff] }
 0x154   : > { %3927 = vmatpush.xpose.msk.msra.mxu2 %vm548_vm0, %v931_v53 }
 0x158   : > { %3928 = vmatpush.xpose.msk.msra.mxu2 %vm548_vm0, %v930_v54  ;;  %v1556_v54 = vld [vmem:[%s4457_s23 + $0x68] sm:$0xff] }
 0x15a   : > { %v779_v56 = vpop.permute.xlu1 %778  ;;  %v721_v57 = vpop.permute.xlu2 %720 }
 0x15b   : > { %816 = vst.msk [vmem:[#allocation2 + $0x150] sm:$0xff] %vm548_vm0, %v779_v56  ;;  %v843_v58 = vpop.permute.xlu0 %842  ;;  %3929 = vmatmul.msk.f32.vlgmr.msra.gmra.mxu2 %vm548_vm0, %v893_v55  ;;  %v545_v55 = vld [vmem:[%s4292_s24 + $0x78] sm:$0xff]  ;;  %s4210_s24 = smov 120  }
 0x15c   : > { %880 = vst.msk [vmem:[#allocation2 + $0x158] sm:$0xff] %vm548_vm0, %v843_v58  ;;  %3889 = vmatmul.msk.f32.gmra.mxu0 %vm548_vm0, %v545_v55  ;;  %v1905_v55 = vld [vmem:[%s4626_s15 + $0x38] sm:$0xff] }
 0x15d   : > { %755 = vst.msk [vmem:[#allocation2 + $0x1a8] sm:$0xff] %vm548_vm0, %v721_v57 }
 0x162   : > { %v705_v59 = vpop.permute.xlu2 %704  ;;  %v944_v61 = vld [vmem:[#allocation2 + $0x150] sm:$0xff] }
 0x163   : > { %747 = vst.msk [vmem:[#allocation2 + $0xa8] sm:$0xff] %vm548_vm0, %v705_v59  ;;  %v945_v60 = vld [vmem:[#allocation2 + $0x158] sm:$0xff]  ;;  %v894_v59 = vld [vmem:[%s4395_s13 + $0x40] sm:$0xff] }
 0x164   : > { %3940 = vmatpush.xpose.msk.msrb.mxu2 %vm548_vm0, %v945_v60  ;;  %v955_v12 = vld [vmem:[#allocation2 + $0x1a8] sm:$0xff] }
 0x168   : > { %3941 = vmatpush.xpose.msk.msrb.mxu2 %vm548_vm0, %v944_v61 }
 0x16a   : > { %v711_v62 = vpop.permute.xlu2 %710  ;;  %v923_v23 = vld [vmem:[#allocation2 + $0xa8] sm:$0xff] }
 0x16b   : > { %750 = vst.msk [vmem:[#allocation2 + $0x108] sm:$0xff] %vm548_vm0, %v711_v62 }
 0x16c   : > { %3942 = vmatpush.xpose.msk.msrb.mxu2 %vm548_vm0, %v943_v63 }
 0x170   : > { %3943 = vmatpush.xpose.msk.msrb.mxu2 %vm548_vm0, %v942_v0 }
 0x172   : > { %v717_v2 = vpop.permute.xlu2 %716  ;;  %v785_v3 = vpop.permute.xlu1 %784  ;;  %v935_v32 = vld [vmem:[#allocation2 + $0x108] sm:$0xff] }
 0x173   : > { %753 = vst.msk [vmem:[#allocation2 + $0x168] sm:$0xff] %vm548_vm0, %v717_v2  ;;  %v849_v4 = vpop.permute.xlu0 %848  ;;  %3944 = vmatmul.msk.f32.vlgmr.msrb.gmra.mxu2 %vm548_vm0, %v896_v1  ;;  %v958_v1 = vld [vmem:[#allocation2 + $0x1c0] sm:$0xff] }
 0x174   : > { %819 = vst.msk [vmem:[#allocation2 + $0x1b0] sm:$0xff] %vm548_vm0, %v785_v3 }
 0x175   : > { %883 = vst.msk [vmem:[#allocation2 + $0x1b8] sm:$0xff] %vm548_vm0, %v849_v4 }
 0x17a   : > { %v769_v5 = vpop.permute.xlu1 %768  ;;  %v947_v38 = vld [vmem:[#allocation2 + $0x168] sm:$0xff]  ;;  %v723_v58 = vpop.permute.xlu2 %722 }
 0x17b   : > { %811 = vst.msk [vmem:[#allocation2 + $0xb0] sm:$0xff] %vm548_vm0, %v769_v5  ;;  %v833_v6 = vpop.permute.xlu0 %832  ;;  %v956_v8 = vld [vmem:[#allocation2 + $0x1b0] sm:$0xff] }
 0x17c   : > { %875 = vst.msk [vmem:[#allocation2 + $0xb8] sm:$0xff] %vm548_vm0, %v833_v6  ;;  %v957_v7 = vld [vmem:[#allocation2 + $0x1b8] sm:$0xff] }
 0x17d   : > { %3955 = vmatpush.xpose.msk.msra.mxu2 %vm548_vm0, %v957_v7  ;;  %756 = vst.msk [vmem:[#allocation2 + $0x1c8] sm:$0xff] %vm548_vm0, %v723_v58 }
 0x181   : > { %3956 = vmatpush.xpose.msk.msra.mxu2 %vm548_vm0, %v956_v8 }
 0x182   : > { %v775_v9 = vpop.permute.xlu1 %774  ;;  %v924_v13 = vld [vmem:[#allocation2 + $0xb0] sm:$0xff] }
 0x183   : > { %814 = vst.msk [vmem:[#allocation2 + $0x110] sm:$0xff] %vm548_vm0, %v775_v9  ;;  %v839_v10 = vpop.permute.xlu0 %838  ;;  %v925_v11 = vld [vmem:[#allocation2 + $0xb8] sm:$0xff] }
 0x184   : > { %878 = vst.msk [vmem:[#allocation2 + $0x118] sm:$0xff] %vm548_vm0, %v839_v10  ;;  %3915 = vmatpush.xpose.msk.msra.mxu3 %vm548_vm0, %v925_v11  ;;  %v959_v63 = vld [vmem:[#allocation2 + $0x1c8] sm:$0xff] }
 0x185   : > { %3957 = vmatpush.xpose.msk.msra.mxu2 %vm548_vm0, %v955_v12  ;;  %v1557_v12 = vld [vmem:[%s4457_s23 + $0x70] sm:$0xff] }
 0x188   : > { %3916 = vmatpush.xpose.msk.msra.mxu3 %vm548_vm0, %v924_v13 }
 0x189   : > { %3958 = vmatpush.xpose.msk.msra.mxu2 %vm548_vm0, %v954_v15  ;;  %v897_v15 = vld [vmem:[%s4395_s13 + $0x58] sm:$0xff] }
 0x18a   : > { %v781_v20 = vpop.permute.xlu1 %780  ;;  %v936_v31 = vld [vmem:[#allocation2 + $0x110] sm:$0xff] }
 0x18b   : > { %817 = vst.msk [vmem:[#allocation2 + $0x170] sm:$0xff] %vm548_vm0, %v781_v20  ;;  %v845_v21 = vpop.permute.xlu0 %844  ;;  %v937_v27 = vld [vmem:[#allocation2 + $0x118] sm:$0xff] }
 0x18c   : > { %881 = vst.msk [vmem:[#allocation2 + $0x178] sm:$0xff] %vm548_vm0, %v845_v21  ;;  %3959 = vmatmul.msk.f32.vlgmr.msra.gmra.mxu2 %vm548_vm0, %v899_v17  ;;  %3917 = vmatpush.xpose.msk.msra.mxu3 %vm548_vm0, %v923_v23  ;;  %v900_v23 = vld [vmem:[%s4395_s13 + $0x70] sm:$0xff] }
 0x18d   : > { %1624 = vmatpush.msrb.mxu2 %v1559_v14 }
 0x190   : > { %3918 = vmatpush.xpose.msk.msra.mxu3 %vm548_vm0, %v922_v26 }
 0x192   : > { %v948_v36 = vld [vmem:[#allocation2 + $0x170] sm:$0xff]  ;;  %v787_v57 = vpop.permute.xlu1 %786 }
 0x193   : > { %3919 = vmatmul.msk.f32.vlgmr.msra.gmra.mxu3 %vm548_vm0, %v891_v29  ;;  %v949_v35 = vld [vmem:[#allocation2 + $0x178] sm:$0xff]  ;;  %v851_v56 = vpop.permute.xlu0 %850  ;;  %820 = vst.msk [vmem:[#allocation2 + $0x1d0] sm:$0xff] %vm548_vm0, %v787_v57 }
 0x194   : > { %3930 = vmatpush.xpose.msk.msrb.mxu3 %vm548_vm0, %v937_v27  ;;  %3970 = vmatmul.msk.f32.vlgmr.msrb.gmra.mxu2 %vm1560_vm1, %v1543_v30  ;;  %884 = vst.msk [vmem:[#allocation2 + $0x1d8] sm:$0xff] %vm548_vm0, %v851_v56  ;;  %v1558_v29 = vld [vmem:[%s4457_s23 + $0x78] sm:$0xff]  ;;  %s4214_s23 = smov 32  }
 0x198   : > { %3931 = vmatpush.xpose.msk.msrb.mxu3 %vm548_vm0, %v936_v31 }
 0x19a   : > { %v960_v62 = vld [vmem:[#allocation2 + $0x1d0] sm:$0xff] }
 0x19b   : > { %v961_v60 = vld [vmem:[#allocation2 + $0x1d8] sm:$0xff] }
 0x19c   : > { %3932 = vmatpush.xpose.msk.msrb.mxu3 %vm548_vm0, %v935_v32  ;;  %3971 = vmatmul.msk.f32.gmra.mxu2 %vm1560_vm1, %v1544_v33 }
 0x1a0   : > { %3933 = vmatpush.xpose.msk.msrb.mxu3 %vm548_vm0, %v934_v34 }
 0x1a3   : > { %3934 = vmatmul.msk.f32.vlgmr.msrb.gmra.mxu3 %vm548_vm0, %v894_v59 }
 0x1a4   : > { %3945 = vmatpush.xpose.msk.msra.mxu3 %vm548_vm0, %v949_v35  ;;  %3972 = vmatmul.msk.f32.gmra.mxu2 %vm1560_vm1, %v1545_v37  ;;  %v1898_v37 = vld [vmem:[%s4626_s15] sm:$0xff] }
 0x1a8   : > { %3946 = vmatpush.xpose.msk.msra.mxu3 %vm548_vm0, %v948_v36 }
 0x1ac   : > { %3947 = vmatpush.xpose.msk.msra.mxu3 %vm548_vm0, %v947_v38  ;;  %3973 = vmatmul.msk.f32.gmra.mxu2 %vm1560_vm1, %v1546_v40 }
 0x1b0   : > { %3948 = vmatpush.xpose.msk.msra.mxu3 %vm548_vm0, %v946_v39 }
 0x1b1   : > { %v1033_v44 = vpop.f32.mrf.mxu2 }
 0x1b2   : > { %1528 = vst.msk [vmem:[%s4488_s27 + $0x8] sm:$0xff] %vm1526_vm2, %v1033_v44 }
 0x1b3   : > { %3949 = vmatmul.msk.f32.vlgmr.msra.gmra.mxu3 %vm548_vm0, %v897_v15  ;;  %v1911_v15 = vld [vmem:[%s4626_s15 + $0x68] sm:$0xff] }
 0x1b4   : > { %3974 = vmatmul.msk.f32.gmra.mxu2 %vm1560_vm1, %v1547_v41  ;;  %3960 = vmatpush.xpose.msk.msrb.mxu3 %vm548_vm0, %v961_v60 }
 0x1b8   : > { %3961 = vmatpush.xpose.msk.msrb.mxu3 %vm548_vm0, %v960_v62 }
 0x1bc   : > { %3975 = vmatmul.msk.f32.gmra.mxu2 %vm1560_vm1, %v1548_v42  ;;  %3962 = vmatpush.xpose.msk.msrb.mxu3 %vm548_vm0, %v959_v63  ;;  %v1908_v63 = vld [vmem:[%s4626_s15 + $0x50] sm:$0xff] }
 0x1c0   : > { %3963 = vmatpush.xpose.msk.msrb.mxu3 %vm548_vm0, %v958_v1 }
 0x1c3   : > { %3964 = vmatmul.msk.f32.vlgmr.msrb.gmra.mxu3 %vm548_vm0, %v900_v23  ;;  %v2619_v23 = vld [vmem:[%s4770_s22] sm:$0xff] }
 0x1c4   : > { %3976 = vmatmul.msk.f32.gmra.mxu2 %vm1560_vm1, %v1549_v43 }
 0x1c5   : > { %v1138_v46 = vpop.f32.mrf.mxu2 }
 0x1c6   : > { %1531 = vst.msk [vmem:[%s4488_s27 + $0x20] sm:$0xff] %vm1526_vm2, %v1138_v46 }
 0x1cc   : > { %3977 = vmatmul.msk.f32.gmra.mxu2 %vm1560_vm1, %v1550_v45 }
 0x1d4   : > { %3978 = vmatmul.msk.f32.gmra.mxu2 %vm1560_vm1, %v1551_v47  ;;  %v1902_v47 = vld [vmem:[%s4626_s15 + $0x20] sm:$0xff] }
 0x1d9   : > { %v4583_v20 = vpop.f32.mrf.mxu0 }
 0x1da   : > { %677 = vst.msk [vmem:[#allocation2 + $0x1e0] sm:$0xff] %vm548_vm0, %v4583_v20 }
 0x1dc   : > { %3979 = vmatmul.msk.f32.gmra.mxu2 %vm1560_vm1, %v1552_v48 }
 0x1de   : > { %v1243_v49 = vpop.f32.mrf.mxu2 }
 0x1df   : > { %1534 = vst.msk [vmem:[%s4488_s27 + $0x38] sm:$0xff] %vm1526_vm2, %v1243_v49 }
 0x1e4   : > { %3980 = vmatmul.msk.f32.gmra.mxu2 %vm1560_vm1, %v1553_v50 }
 0x1ec   : > { %3981 = vmatmul.msk.f32.gmra.mxu2 %vm1560_vm1, %v1554_v51 }
 0x1f4   : > { %3982 = vmatmul.msk.f32.gmra.mxu2 %vm1560_vm1, %v1555_v52 }
 0x1f6   : > { %v1348_v53 = vpop.f32.mrf.mxu2 }
 0x1f7   : > { %1537 = vst.msk [vmem:[%s4488_s27 + $0x50] sm:$0xff] %vm1526_vm2, %v1348_v53 }
 0x1fc   : > { %3983 = vmatmul.msk.f32.gmra.mxu2 %vm1560_vm1, %v1556_v54 }
 0x204   : > { %3984 = vmatmul.msk.f32.gmra.mxu2 %vm1560_vm1, %v1557_v12 }
 0x20c   : > { %3985 = vmatmul.msk.f32.gmra.mxu2 %vm1560_vm1, %v1558_v29 }
 0x20f   : > { %v1453_v61 = vpop.f32.mrf.mxu2 }
 0x210   : > { %1540 = vst.msk [vmem:[%s4488_s27 + $0x68] sm:$0xff] %vm1526_vm2, %v1453_v61 }
 0x216   : > { %v1173_v12 = vpop.f32.mrf.mxu3 }
 0x217   : > { %v1626_v0 = vpop.f32.mrf.mxu2  ;;  %1532 = vst.msk [vmem:[%s4488_s27 + $0x28] sm:$0xff] %vm1526_vm2, %v1173_v12  ;;  %v2627_v12 = vld [vmem:[%s4770_s22 + $0x40] sm:$0xff] }
 0x218   : > { %1674 = vst.msk [vmem:[#allocation3] sm:$0xff] %vm1560_vm1, %v1626_v0  ;;  %1706 = vrot.lane.b32.xlu2 %v1626_v0, %s4210_s24  ;;  %1770 = vrot.lane.b32.xlu1 %v1626_v0, %s4207_s28 }
 0x219   : > { %1834 = vrot.lane.b32.xlu0 %v1626_v0, %s4211_s11 }
 0x21f   : > { %v4530_v2 = vpop.f32.mrf.mxu2  ;;  %v1914_v36 = vld [vmem:[#allocation3] sm:$0xff] }
 0x220   : > { %1675 = vst.msk [vmem:[#allocation3 + $0x20] sm:$0xff] %vm1560_vm1, %v4530_v2 }
 0x227   : > { %v1632_v3 = vpop.f32.mrf.mxu2 }
 0x228   : > { %1676 = vst.msk [vmem:[#allocation3 + $0x40] sm:$0xff] %vm1560_vm1, %v1632_v3  ;;  %1710 = vrot.lane.b32.xlu2 %v1632_v3, %s4210_s24  ;;  %1774 = vrot.lane.b32.xlu1 %v1632_v3, %s4207_s28 }
 0x229   : > { %1838 = vrot.lane.b32.xlu0 %v1632_v3, %s4211_s11 }
 0x22f   : > { %v4538_v4 = vpop.f32.mrf.mxu2  ;;  %v1922_v43 = vld [vmem:[#allocation3 + $0x40] sm:$0xff] }
 0x230   : > { %1677 = vst.msk [vmem:[#allocation3 + $0x60] sm:$0xff] %vm1560_vm1, %v4538_v4 }
 0x237   : > { %v1638_v5 = vpop.f32.mrf.mxu2 }
 0x238   : > { %1678 = vst.msk [vmem:[#allocation3 + $0x80] sm:$0xff] %vm1560_vm1, %v1638_v5  ;;  %1714 = vrot.lane.b32.xlu2 %v1638_v5, %s4210_s24  ;;  %1778 = vrot.lane.b32.xlu1 %v1638_v5, %s4207_s28 }
 0x239   : > { %1842 = vrot.lane.b32.xlu0 %v1638_v5, %s4211_s11 }
 0x23f   : > { %v4546_v6 = vpop.f32.mrf.mxu2 }
 0x240   : > { %1679 = vst.msk [vmem:[#allocation3 + $0xa0] sm:$0xff] %vm1560_vm1, %v4546_v6 }
 0x247   : > { %v4550_v7 = vpop.f32.mrf.mxu2 }
 0x248   : > { %1680 = vst.msk [vmem:[#allocation3 + $0xc0] sm:$0xff] %vm1560_vm1, %v4550_v7 }
 0x24f   : > { %v1647_v8 = vpop.f32.mrf.mxu2 }
 0x250   : > { %1681 = vst.msk [vmem:[#allocation3 + $0xe0] sm:$0xff] %vm1560_vm1, %v1647_v8  ;;  %1720 = vrot.lane.b32.xlu2 %v1647_v8, %s4210_s24  ;;  %1784 = vrot.lane.b32.xlu1 %v1647_v8, %s4207_s28 }
 0x251   : > { %1848 = vrot.lane.b32.xlu0 %v1647_v8, %s4211_s11 }
 0x257   : > { %v4558_v9 = vpop.f32.mrf.mxu2  ;;  %v1942_v51 = vld [vmem:[#allocation3 + $0xe0] sm:$0xff] }
 0x258   : > { %1682 = vst.msk [vmem:[#allocation3 + $0x100] sm:$0xff] %vm1560_vm1, %v4558_v9 }
 0x25f   : > { %v4562_v10 = vpop.f32.mrf.mxu2 }
 0x260   : > { %1683 = vst.msk [vmem:[#allocation3 + $0x120] sm:$0xff] %vm1560_vm1, %v4562_v10 }
 0x267   : > { %v1656_v11 = vpop.f32.mrf.mxu2 }
 0x268   : > { %1684 = vst.msk [vmem:[#allocation3 + $0x140] sm:$0xff] %vm1560_vm1, %v1656_v11  ;;  %1726 = vrot.lane.b32.xlu2 %v1656_v11, %s4210_s24  ;;  %1790 = vrot.lane.b32.xlu1 %v1656_v11, %s4207_s28 }
 0x269   : > { %1854 = vrot.lane.b32.xlu0 %v1656_v11, %s4211_s11 }
 0x26f   : > { %v4572_v13 = vpop.f32.mrf.mxu2  ;;  %v1954_v62 = vld [vmem:[#allocation3 + $0x140] sm:$0xff] }
 0x270   : > { %1685 = vst.msk [vmem:[#allocation3 + $0x160] sm:$0xff] %vm1560_vm1, %v4572_v13 }
 0x272   : > { %v1707_v14 = vpop.permute.xlu2 %1706 }
 0x273   : > { %1754 = vst.msk [vmem:[#allocation3 + $0x8] sm:$0xff] %vm1560_vm1, %v1707_v14 }
 0x277   : > { %v4579_v17 = vpop.f32.mrf.mxu2 }
 0x278   : > { %1686 = vst.msk [vmem:[#allocation3 + $0x180] sm:$0xff] %vm1560_vm1, %v4579_v17 }
 0x27a   : > { %v1915_v35 = vld [vmem:[#allocation3 + $0x8] sm:$0xff] }
 0x27f   : > { %v1665_v21 = vpop.f32.mrf.mxu2 }
 0x280   : > { %1687 = vst.msk [vmem:[#allocation3 + $0x1a0] sm:$0xff] %vm1560_vm1, %v1665_v21  ;;  %1732 = vrot.lane.b32.xlu2 %v1665_v21, %s4210_s24  ;;  %1796 = vrot.lane.b32.xlu1 %v1665_v21, %s4207_s28 }
 0x281   : > { %1860 = vrot.lane.b32.xlu0 %v1665_v21, %s4211_s11 }
 0x282   : > { %v1711_v24 = vpop.permute.xlu2 %1710 }
 0x283   : > { %1756 = vst.msk [vmem:[#allocation3 + $0x48] sm:$0xff] %vm1560_vm1, %v1711_v24  ;;  %v1278_v24 = vpop.f32.mrf.mxu3 }
 0x284   : > { %1535 = vst.msk [vmem:[%s4488_s27 + $0x40] sm:$0xff] %vm1526_vm2, %v1278_v24  ;;  %v938_v24 = vld [vmem:[#allocation2 + $0x120] sm:$0xff] }
 0x287   : > { %v1668_v61 = vpop.f32.mrf.mxu2  ;;  %v1966_v14 = vld [vmem:[#allocation3 + $0x1a0] sm:$0xff] }
 0x288   : > { %700 = vrot.lane.b32.xlu2 %v4337_v19, %s4207_s28  ;;  %698 = vrot.lane.b32.xlu1 %v4332_v18, %s4207_s28  ;;  %1688 = vst.msk [vmem:[#allocation3 + $0x1c0] sm:$0xff] %vm1560_vm1, %v1668_v61 }
 0x289   : > { %694 = vrot.lane.b32.xlu0 %v4325_v16, %s4207_s28 }
 0x28a   : > { %v1771_v26 = vpop.permute.xlu1 %1770  ;;  %v1923_v42 = vld [vmem:[#allocation3 + $0x48] sm:$0xff] }
 0x28b   : > { %1818 = vst.msk [vmem:[#allocation3 + $0x10] sm:$0xff] %vm1560_vm1, %v1771_v26  ;;  %v1835_v27 = vpop.permute.xlu0 %1834 }
 0x28c   : > { %1882 = vst.msk [vmem:[#allocation3 + $0x18] sm:$0xff] %vm1560_vm1, %v1835_v27 }
 0x290   : > { %718 = vrot.lane.b32.xlu2 %v4364_v28, %s4207_s28  ;;  %712 = vrot.lane.b32.xlu1 %v4355_v25, %s4207_s28 }
 0x291   : > { %706 = vrot.lane.b32.xlu0 %v4346_v22, %s4207_s28 }
 0x292   : > { %v1715_v30 = vpop.permute.xlu2 %1714  ;;  %v1916_v32 = vld [vmem:[#allocation3 + $0x10] sm:$0xff] }
 0x293   : > { %1758 = vst.msk [vmem:[#allocation3 + $0x88] sm:$0xff] %vm1560_vm1, %v1715_v30  ;;  %v1917_v31 = vld [vmem:[#allocation3 + $0x18] sm:$0xff]  ;;  %v1671_v30 = vpop.f32.mrf.mxu2 }
 0x294   : > { %3986 = vmatpush.xpose.msk.msra.mxu3 %vm1560_vm1, %v1917_v31  ;;  %1689 = vst.msk [vmem:[#allocation3 + $0x1e0] sm:$0xff] %vm1560_vm1, %v1671_v30  ;;  %v2620_v31 = vld [vmem:[%s4770_s22 + $0x8] sm:$0xff] }
 0x298   : > { %3987 = vmatpush.xpose.msk.msra.mxu3 %vm1560_vm1, %v1916_v32  ;;  %762 = vrot.lane.b32.xlu2 %v4332_v18, %s4209_s30 }
 0x299   : > { %758 = vrot.lane.b32.xlu1 %v4325_v16, %s4209_s30  ;;  %724 = vrot.lane.b32.xlu0 %v4583_v20, %s4207_s28 }
 0x29a   : > { %v1775_v33 = vpop.permute.xlu1 %1774 }
 0x29b   : > { %1820 = vst.msk [vmem:[#allocation3 + $0x50] sm:$0xff] %vm1560_vm1, %v1775_v33  ;;  %v1839_v34 = vpop.permute.xlu0 %1838 }
 0x29c   : > { %1884 = vst.msk [vmem:[#allocation3 + $0x58] sm:$0xff] %vm1560_vm1, %v1839_v34  ;;  %3988 = vmatpush.xpose.msk.msra.mxu3 %vm1560_vm1, %v1915_v35 }
 0x2a0   : > { %3989 = vmatpush.xpose.msk.msra.mxu3 %vm1560_vm1, %v1914_v36  ;;  %770 = vrot.lane.b32.xlu2 %v4346_v22, %s4209_s30  ;;  %v1383_v36 = vpop.f32.mrf.mxu3 }
 0x2a1   : > { %822 = vrot.lane.b32.xlu1 %v4325_v16, %s4208_s29  ;;  %764 = vrot.lane.b32.xlu0 %v4337_v19, %s4209_s30  ;;  %1538 = vst.msk [vmem:[%s4488_s27 + $0x58] sm:$0xff] %vm1526_vm2, %v1383_v36 }
 0x2a2   : > { %v1924_v39 = vld [vmem:[#allocation3 + $0x50] sm:$0xff] }
 0x2a3   : > { %v1925_v38 = vld [vmem:[#allocation3 + $0x58] sm:$0xff]  ;;  %3990 = vmatmul.msk.f32.vlgmr.msra.gmra.mxu3 %vm1560_vm1, %v1898_v37 }
 0x2a4   : > { %3996 = vmatpush.xpose.msk.msrb.mxu3 %vm1560_vm1, %v1925_v38  ;;  %v2621_v38 = vld [vmem:[%s4770_s22 + $0x10] sm:$0xff] }
 0x2a8   : > { %3997 = vmatpush.xpose.msk.msrb.mxu3 %vm1560_vm1, %v1924_v39  ;;  %782 = vrot.lane.b32.xlu2 %v4364_v28, %s4209_s30 }
 0x2a9   : > { %826 = vrot.lane.b32.xlu1 %v4332_v18, %s4208_s29  ;;  %776 = vrot.lane.b32.xlu0 %v4355_v25, %s4209_s30  ;;  %v1900_v18 = vld [vmem:[%s4626_s15 + $0x10] sm:$0xff] }
 0x2aa   : > { %v1721_v16 = vpop.permute.xlu2 %1720  ;;  %v1779_v40 = vpop.permute.xlu1 %1778 }
 0x2ab   : > { %1761 = vst.msk [vmem:[#allocation3 + $0xe8] sm:$0xff] %vm1560_vm1, %v1721_v16  ;;  %v1843_v41 = vpop.permute.xlu0 %1842 }
 0x2ac   : > { %1822 = vst.msk [vmem:[#allocation3 + $0x90] sm:$0xff] %vm1560_vm1, %v1779_v40  ;;  %3998 = vmatpush.xpose.msk.msrb.mxu3 %vm1560_vm1, %v1923_v42  ;;  %v902_v42 = vld [vmem:[#allocation2] sm:$0xff] }
 0x2ad   : > { %1886 = vst.msk [vmem:[#allocation3 + $0x98] sm:$0xff] %vm1560_vm1, %v1843_v41 }
 0x2b0   : > { %3999 = vmatpush.xpose.msk.msrb.mxu3 %vm1560_vm1, %v1922_v43  ;;  %834 = vrot.lane.b32.xlu2 %v4346_v22, %s4208_s29  ;;  %v1930_v22 = vld [vmem:[#allocation3 + $0x80] sm:$0xff] }
 0x2b1   : > { %828 = vrot.lane.b32.xlu1 %v4337_v19, %s4208_s29  ;;  %788 = vrot.lane.b32.xlu0 %v4583_v20, %s4209_s30  ;;  %v1931_v19 = vld [vmem:[#allocation3 + $0x88] sm:$0xff] }
 0x2b2   : > { %v1943_v50 = vld [vmem:[#allocation3 + $0xe8] sm:$0xff] }
 0x2b3   : > { %4000 = vmatmul.msk.f32.vlgmr.msrb.gmra.mxu3 %vm1560_vm1, %v1900_v18  ;;  %v1932_v45 = vld [vmem:[#allocation3 + $0x90] sm:$0xff]  ;;  %v886_v18 = vld [vmem:[%s4395_s13] sm:$0xff] }
 0x2b4   : > { %v1933_v44 = vld [vmem:[#allocation3 + $0x98] sm:$0xff] }
 0x2b5   : > { %4006 = vmatpush.xpose.msk.msra.mxu3 %vm1560_vm1, %v1933_v44  ;;  %v2622_v44 = vld [vmem:[%s4770_s22 + $0x18] sm:$0xff] }
 0x2b8   : > { %852 = vrot.lane.b32.xlu2 %v4583_v20, %s4208_s29 }
 0x2b9   : > { %4007 = vmatpush.xpose.msk.msra.mxu3 %vm1560_vm1, %v1932_v45  ;;  %846 = vrot.lane.b32.xlu1 %v4364_v28, %s4208_s29 }
 0x2ba   : > { %840 = vrot.lane.b32.xlu0 %v4355_v25, %s4208_s29  ;;  %s518_s29 = sld [smem:[#allocation6 + %s4280_s18]] }
 0x2bd   : > { %4008 = vmatpush.xpose.msk.msra.mxu3 %vm1560_vm1, %v1931_v19 }
 0x2c0   : > { %1716 = vrot.lane.b32.xlu2 %v4546_v6, %s4210_s24  ;;  %p519_p6 = scmp.lt.s32.totalorder %s518_s29, 1 }
 0x2c1   : > { %4009 = vmatpush.xpose.msk.msra.mxu3 %vm1560_vm1, %v1930_v22  ;;  %1712 = vrot.lane.b32.xlu1 %v4538_v4, %s4210_s24 }
 0x2c2   : > { %1708 = vrot.lane.b32.xlu0 %v4530_v2, %s4210_s24  ;;  %v1727_v46 = vpop.permute.xlu2 %1726  ;;  %v1785_v28 = vpop.permute.xlu1 %1784  ;;  %s5318_s29 = smov (!%p519_p6, %s518_s29), 1 }
 0x2c3   : > { %1764 = vst.msk [vmem:[#allocation3 + $0x148] sm:$0xff] %vm1560_vm1, %v1727_v46  ;;  %v1849_v25 = vpop.permute.xlu0 %1848  ;;  %s3871_s18 = sshll.u32 %s5318_s29, 2 }
 0x2c4   : > { %1825 = vst.msk [vmem:[#allocation3 + $0xf0] sm:$0xff] %vm1560_vm1, %v1785_v28  ;;  %4010 = vmatmul.msk.f32.vlgmr.msra.gmra.mxu3 %vm1560_vm1, %v1902_v47  ;;  %s522_s0 = scalar_lea.vmem %s5309_s9, %s3871_s18  ;;  %v1488_v28 = vpop.f32.mrf.mxu3  ;;  %v2623_v47 = vld [vmem:[%s4770_s22 + $0x20] sm:$0xff] }
 0x2c5   : > { %1889 = vst.msk [vmem:[#allocation3 + $0xf8] sm:$0xff] %vm1560_vm1, %v1849_v25 }
 0x2c6   : > { %1541 = vst.msk [vmem:[%s4488_s27 + $0x70] sm:$0xff] %vm1526_vm2, %v1488_v28 }
 0x2c8   : > { %1724 = vrot.lane.b32.xlu2 %v4562_v10, %s4210_s24 }
 0x2c9   : > { %1722 = vrot.lane.b32.xlu1 %v4558_v9, %s4210_s24 }
 0x2ca   : > { %1718 = vrot.lane.b32.xlu0 %v4550_v7, %s4210_s24  ;;  %v1955_v60 = vld [vmem:[#allocation3 + $0x148] sm:$0xff] }
 0x2cb   : > { %v1944_v49 = vld [vmem:[#allocation3 + $0xf0] sm:$0xff] }
 0x2cc   : > { %v1945_v48 = vld [vmem:[#allocation3 + $0xf8] sm:$0xff] }
 0x2cd   : > { %4021 = vmatpush.xpose.msk.msrb.mxu3 %vm1560_vm1, %v1945_v48 }
 0x2d0   : > { %1836 = vrot.lane.b32.xlu2 %v4530_v2, %s4211_s11 }
 0x2d1   : > { %4022 = vmatpush.xpose.msk.msrb.mxu3 %vm1560_vm1, %v1944_v49  ;;  %1730 = vrot.lane.b32.xlu1 %v4579_v17, %s4210_s24 }
 0x2d2   : > { %1728 = vrot.lane.b32.xlu0 %v4572_v13, %s4210_s24 }
 0x2d5   : > { %4023 = vmatpush.xpose.msk.msrb.mxu3 %vm1560_vm1, %v1943_v50 }
 0x2d8   : > { %1840 = vrot.lane.b32.xlu2 %v4538_v4, %s4211_s11 }
 0x2d9   : > { %4024 = vmatpush.xpose.msk.msrb.mxu3 %vm1560_vm1, %v1942_v51  ;;  %1776 = vrot.lane.b32.xlu1 %v4538_v4, %s4207_s28  ;;  %v910_v51 = vld [vmem:[#allocation2 + $0x40] sm:$0xff] }
 0x2da   : > { %1772 = vrot.lane.b32.xlu0 %v4530_v2, %s4207_s28  ;;  %v1733_v52 = vpop.permute.xlu2 %1732  ;;  %v1791_v53 = vpop.permute.xlu1 %1790 }
 0x2db   : > { %1767 = vst.msk [vmem:[#allocation3 + $0x1a8] sm:$0xff] %vm1560_vm1, %v1733_v52  ;;  %v1855_v54 = vpop.permute.xlu0 %1854 }
 0x2dc   : > { %1828 = vst.msk [vmem:[#allocation3 + $0x150] sm:$0xff] %vm1560_vm1, %v1791_v53  ;;  %4025 = vmatmul.msk.f32.vlgmr.msrb.gmra.mxu3 %vm1560_vm1, %v1905_v55  ;;  %v888_v53 = vld [vmem:[%s4395_s13 + $0x10] sm:$0xff]  ;;  %v2624_v55 = vld [vmem:[%s4770_s22 + $0x28] sm:$0xff] }
 0x2dd   : > { %1892 = vst.msk [vmem:[#allocation3 + $0x158] sm:$0xff] %vm1560_vm1, %v1855_v54 }
 0x2e0   : > { %1780 = vrot.lane.b32.xlu2 %v4546_v6, %s4207_s28 }
 0x2e1   : > { %1850 = vrot.lane.b32.xlu1 %v4558_v9, %s4211_s11 }
 0x2e2   : > { %1844 = vrot.lane.b32.xlu0 %v4546_v6, %s4211_s11  ;;  %v701_v56 = vpop.permute.xlu2 %700  ;;  %v1967_v11 = vld [vmem:[#allocation3 + $0x1a8] sm:$0xff] }
 0x2e3   : > { %745 = vst.msk [vmem:[#allocation2 + $0x68] sm:$0xff] %vm548_vm0, %v701_v56  ;;  %v1956_v58 = vld [vmem:[#allocation3 + $0x150] sm:$0xff] }
 0x2e4   : > { %v1957_v57 = vld [vmem:[#allocation3 + $0x158] sm:$0xff] }
 0x2e5   : > { %4036 = vmatpush.xpose.msk.msra.mxu3 %vm1560_vm1, %v1957_v57 }
 0x2e8   : > { %1782 = vrot.lane.b32.xlu2 %v4550_v7, %s4207_s28 }
 0x2e9   : > { %4037 = vmatpush.xpose.msk.msra.mxu3 %vm1560_vm1, %v1956_v58  ;;  %1852 = vrot.lane.b32.xlu1 %v4562_v10, %s4211_s11 }
 0x2ea   : > { %1846 = vrot.lane.b32.xlu0 %v4550_v7, %s4211_s11  ;;  %v719_v59 = vpop.permute.xlu2 %718 }
 0x2eb   : > { %754 = vst.msk [vmem:[#allocation2 + $0x188] sm:$0xff] %vm548_vm0, %v719_v59  ;;  %v915_v59 = vld [vmem:[#allocation2 + $0x68] sm:$0xff] }
 0x2ed   : > { %4038 = vmatpush.xpose.msk.msra.mxu3 %vm1560_vm1, %v1955_v60  ;;  %v914_v60 = vld [vmem:[#allocation2 + $0x60] sm:$0xff] }
 0x2f0   : > { %1856 = vrot.lane.b32.xlu2 %v4572_v13, %s4211_s11 }
 0x2f1   : > { %4039 = vmatpush.xpose.msk.msra.mxu3 %vm1560_vm1, %v1954_v62  ;;  %1792 = vrot.lane.b32.xlu1 %v4572_v13, %s4207_s28  ;;  %v2635_v13 = vld [vmem:[%s522_s0] sm:$0xf] }
 0x2f2   : > { %1786 = vrot.lane.b32.xlu0 %v4558_v9, %s4207_s28  ;;  %v763_v0 = vpop.permute.xlu2 %762  ;;  %v1797_v1 = vpop.permute.xlu1 %1796 }
 0x2f3   : > { %808 = vst.msk [vmem:[#allocation2 + $0x50] sm:$0xff] %vm548_vm0, %v763_v0  ;;  %v1861_v2 = vpop.permute.xlu0 %1860  ;;  %v889_v0 = vld [vmem:[%s4395_s13 + $0x18] sm:$0xff] }
 0x2f4   : > { %1831 = vst.msk [vmem:[#allocation3 + $0x1b0] sm:$0xff] %vm1560_vm1, %v1797_v1  ;;  %4040 = vmatmul.msk.f32.vlgmr.msra.gmra.mxu3 %vm1560_vm1, %v1908_v63 }
 0x2f5   : > { %1895 = vst.msk [vmem:[#allocation3 + $0x1b8] sm:$0xff] %vm1560_vm1, %v1861_v2 }
 0x2f8   : > { %1858 = vrot.lane.b32.xlu2 %v4579_v17, %s4211_s11 }
 0x2f9   : > { %1794 = vrot.lane.b32.xlu1 %v4579_v17, %s4207_s28 }
 0x2fa   : > { %1788 = vrot.lane.b32.xlu0 %v4562_v10, %s4207_s28  ;;  %v771_v3 = vpop.permute.xlu2 %770  ;;  %v699_v4 = vpop.permute.xlu1 %698  ;;  %v912_v46 = vld [vmem:[#allocation2 + $0x50] sm:$0xff] }
 0x2fb   : > { %812 = vst.msk [vmem:[#allocation2 + $0xd0] sm:$0xff] %vm548_vm0, %v771_v3  ;;  %v695_v5 = vpop.permute.xlu0 %694  ;;  %v1968_v7 = vld [vmem:[#allocation3 + $0x1b0] sm:$0xff] }
 0x2fc   : > { %744 = vst.msk [vmem:[#allocation2 + $0x48] sm:$0xff] %vm548_vm0, %v699_v4  ;;  %v1969_v6 = vld [vmem:[#allocation3 + $0x1b8] sm:$0xff] }
 0x2fd   : > { %742 = vst.msk [vmem:[#allocation2 + $0x8] sm:$0xff] %vm548_vm0, %v695_v5  ;;  %4051 = vmatpush.xpose.msk.msrb.mxu3 %vm1560_vm1, %v1969_v6  ;;  %v2626_v4 = vld [vmem:[%s4770_s22 + $0x38] sm:$0xff] }
 0x300   : > { %1798 = vrot.lane.b32.xlu2 %v1668_v61, %s4207_s28 }
 0x301   : > { %4052 = vmatpush.xpose.msk.msrb.mxu3 %vm1560_vm1, %v1968_v7  ;;  %1734 = vrot.lane.b32.xlu1 %v1668_v61, %s4210_s24 }
 0x302   : > { %v783_v8 = vpop.permute.xlu2 %782  ;;  %v713_v9 = vpop.permute.xlu1 %712  ;;  %1862 = vrot.lane.b32.xlu0 %v1668_v61, %s4211_s11  ;;  %v2625_v61 = vld [vmem:[%s4770_s22 + $0x30] sm:$0xff] }
 0x303   : > { %818 = vst.msk [vmem:[#allocation2 + $0x190] sm:$0xff] %vm548_vm0, %v783_v8  ;;  %v707_v10 = vpop.permute.xlu0 %706  ;;  %v911_v25 = vld [vmem:[#allocation2 + $0x48] sm:$0xff]  ;;  %v928_v3 = vld [vmem:[#allocation2 + $0xd0] sm:$0xff] }
 0x304   : > { %751 = vst.msk [vmem:[#allocation2 + $0x128] sm:$0xff] %vm548_vm0, %v713_v9  ;;  %v903_v41 = vld [vmem:[#allocation2 + $0x8] sm:$0xff]  ;;  %v926_v9 = vld [vmem:[#allocation2 + $0xc0] sm:$0xff] }
 0x305   : > { %748 = vst.msk [vmem:[#allocation2 + $0xc8] sm:$0xff] %vm548_vm0, %v707_v10  ;;  %4053 = vmatpush.xpose.msk.msrb.mxu3 %vm1560_vm1, %v1967_v11  ;;  %v892_v11 = vld [vmem:[%s4395_s13 + $0x30] sm:$0xff] }
 0x309   : > { %4054 = vmatpush.xpose.msk.msrb.mxu3 %vm1560_vm1, %v1966_v14 }
 0x30a   : > { %v835_v17 = vpop.permute.xlu2 %834  ;;  %1864 = vrot.lane.b32.xlu0 %v1671_v30, %s4211_s11 }
 0x30b   : > { %876 = vst.msk [vmem:[#allocation2 + $0xd8] sm:$0xff] %vm548_vm0, %v835_v17  ;;  %v759_v20 = vpop.permute.xlu1 %758  ;;  %v725_v21 = vpop.permute.xlu0 %724 }
 0x30c   : > { %806 = vst.msk [vmem:[#allocation2 + $0x10] sm:$0xff] %vm548_vm0, %v759_v20  ;;  %4055 = vmatmul.msk.f32.vlgmr.msrb.gmra.mxu3 %vm1560_vm1, %v1911_v15  ;;  %v927_v6 = vld [vmem:[#allocation2 + $0xc8] sm:$0xff] }
 0x30d   : > { %4066 = vmatpush.msk.msra.mxu3 %vm2685_vm3, %v2635_v13  ;;  %757 = vst.msk [vmem:[#allocation2 + $0x1e8] sm:$0xff] %vm548_vm0, %v725_v21  ;;  %v939_v20 = vld [vmem:[#allocation2 + $0x128] sm:$0xff] }
 0x30e   : > { %v2628_v21 = vld [vmem:[%s4770_s22 + $0x48] sm:$0xff] }
 0x312   : > { %v853_v26 = vpop.permute.xlu2 %852  ;;  %1800 = vrot.lane.b32.xlu0 %v1671_v30, %s4207_s28  ;;  %v929_v63 = vld [vmem:[#allocation2 + $0xd8] sm:$0xff]  ;;  %s4212_s28 = smov 116  }
 0x313   : > { %v823_v27 = vpop.permute.xlu1 %822  ;;  %885 = vst.msk [vmem:[#allocation2 + $0x1f8] sm:$0xff] %vm548_vm0, %v853_v26  ;;  %v765_v29 = vpop.permute.xlu0 %764  ;;  %v904_v37 = vld [vmem:[#allocation2 + $0x10] sm:$0xff] }
 0x314   : > { %870 = vst.msk [vmem:[#allocation2 + $0x18] sm:$0xff] %vm548_vm0, %v823_v27  ;;  %4067 = vmatmul.msk.f32.vlgmr.msra.gmra.mxu3 %vm2636_vm4, %v2619_v23 }
 0x315   : > { %809 = vst.msk [vmem:[#allocation2 + $0x70] sm:$0xff] %vm548_vm0, %v765_v29 }
 0x31a   : > { %v1717_v32 = vpop.permute.xlu2 %1716  ;;  %1736 = vrot.lane.b32.xlu0 %v1671_v30, %s4210_s24  ;;  %v895_v30 = vld [vmem:[%s4395_s13 + $0x48] sm:$0xff] }
 0x31b   : > { %v827_v33 = vpop.permute.xlu1 %826  ;;  %1759 = vst.msk [vmem:[#allocation3 + $0xa8] sm:$0xff] %vm1560_vm1, %v1717_v32  ;;  %v777_v34 = vpop.permute.xlu0 %776  ;;  %v905_v35 = vld [vmem:[#allocation2 + $0x18] sm:$0xff]  ;;  %v952_v32 = vld [vmem:[#allocation2 + $0x190] sm:$0xff] }
 0x31c   : > { %872 = vst.msk [vmem:[#allocation2 + $0x58] sm:$0xff] %vm548_vm0, %v827_v33  ;;  %4068 = vmatmul.msk.f32.gmra.mxu3 %vm2636_vm4, %v2620_v31  ;;  %3890 = vmatpush.xpose.msk.msra.mxu1 %vm548_vm0, %v905_v35  ;;  %v916_v54 = vld [vmem:[#allocation2 + $0x70] sm:$0xff] }
 0x31d   : > { %815 = vst.msk [vmem:[#allocation2 + $0x130] sm:$0xff] %vm548_vm0, %v777_v34  ;;  %v2629_v33 = vld [vmem:[%s4770_s22 + $0x50] sm:$0xff] }
 0x320   : > { %3891 = vmatpush.xpose.msk.msra.mxu1 %vm548_vm0, %v904_v37 }
 0x322   : > { %v1725_v39 = vpop.permute.xlu2 %1724  ;;  %v1935_v37 = vld [vmem:[#allocation3 + $0xa8] sm:$0xff] }
 0x323   : > { %v829_v16 = vpop.permute.xlu1 %828  ;;  %1763 = vst.msk [vmem:[#allocation3 + $0x128] sm:$0xff] %vm1560_vm1, %v1725_v39  ;;  %v789_v40 = vpop.permute.xlu0 %788  ;;  %v913_v43 = vld [vmem:[#allocation2 + $0x58] sm:$0xff] }
 0x324   : > { %873 = vst.msk [vmem:[#allocation2 + $0x78] sm:$0xff] %vm548_vm0, %v829_v16  ;;  %4069 = vmatmul.msk.f32.gmra.mxu3 %vm2636_vm4, %v2621_v38  ;;  %3892 = vmatpush.xpose.msk.msra.mxu1 %vm548_vm0, %v903_v41  ;;  %v940_v15 = vld [vmem:[#allocation2 + $0x130] sm:$0xff]  ;;  %v951_v38 = vld [vmem:[#allocation2 + $0x188] sm:$0xff]  ;;  %v965_v16 = vld [vmem:[#allocation2 + $0x1f8] sm:$0xff] }
 0x325   : > { %821 = vst.msk [vmem:[#allocation2 + $0x1f0] sm:$0xff] %vm548_vm0, %v789_v40  ;;  %v1934_v40 = vld [vmem:[#allocation3 + $0xa0] sm:$0xff] }
 0x326   : > { %v4866_v34 = vpop.f32.mrf.mxu3  ;;  %v950_v41 = vld [vmem:[#allocation2 + $0x180] sm:$0xff] }
 0x328   : > { %3893 = vmatpush.xpose.msk.msra.mxu1 %vm548_vm0, %v902_v42 }
 0x32a   : > { %v1837_v45 = vpop.permute.xlu2 %1836 }
 0x32b   : > { %v847_v19 = vpop.permute.xlu1 %846  ;;  %1883 = vst.msk [vmem:[#allocation3 + $0x38] sm:$0xff] %vm1560_vm1, %v1837_v45  ;;  %3894 = vmatmul.msk.f32.vlgmr.msra.gmra.mxu1 %vm548_vm0, %v886_v18  ;;  %v917_v52 = vld [vmem:[#allocation2 + $0x78] sm:$0xff]  ;;  %v1903_v18 = vld [vmem:[%s4626_s15 + $0x28] sm:$0xff] }
 0x32c   : > { %3900 = vmatpush.xpose.msk.msrb.mxu1 %vm548_vm0, %v913_v43  ;;  %882 = vst.msk [vmem:[#allocation2 + $0x198] sm:$0xff] %vm548_vm0, %v847_v19  ;;  %4070 = vmatmul.msk.f32.gmra.mxu3 %vm2636_vm4, %v2622_v44  ;;  %v841_v22 = vpop.permute.xlu0 %840  ;;  %v2630_v43 = vld [vmem:[%s4770_s22 + $0x58] sm:$0xff]  ;;  %v898_v44 = vld [vmem:[%s4395_s13 + $0x60] sm:$0xff] }
 0x32d   : > { %879 = vst.msk [vmem:[#allocation2 + $0x138] sm:$0xff] %vm548_vm0, %v841_v22  ;;  %v964_v22 = vld [vmem:[#allocation2 + $0x1f0] sm:$0xff] }
 0x330   : > { %3901 = vmatpush.xpose.msk.msrb.mxu1 %vm548_vm0, %v912_v46 }
 0x332   : > { %v1841_v48 = vpop.permute.xlu2 %1840 }
 0x333   : > { %v1713_v49 = vpop.permute.xlu1 %1712  ;;  %1885 = vst.msk [vmem:[#allocation3 + $0x78] sm:$0xff] %vm1560_vm1, %v1841_v48  ;;  %v953_v29 = vld [vmem:[#allocation2 + $0x198] sm:$0xff]  ;;  %v2631_v48 = vld [vmem:[%s4770_s22 + $0x60] sm:$0xff] }
 0x334   : > { %3902 = vmatpush.xpose.msk.msrb.mxu1 %vm548_vm0, %v911_v25  ;;  %1757 = vst.msk [vmem:[#allocation3 + $0x68] sm:$0xff] %vm1560_vm1, %v1713_v49  ;;  %4071 = vmatmul.msk.f32.gmra.mxu3 %vm2636_vm4, %v2623_v47  ;;  %v1709_v50 = vpop.permute.xlu0 %1708  ;;  %v941_v10 = vld [vmem:[#allocation2 + $0x138] sm:$0xff]  ;;  %v963_v25 = vld [vmem:[#allocation2 + $0x1e8] sm:$0xff] }
 0x335   : > { %1755 = vst.msk [vmem:[#allocation3 + $0x28] sm:$0xff] %vm1560_vm1, %v1709_v50 }
 0x336   : > { %v4881_v45 = vpop.f32.mrf.mxu3 }
 0x338   : > { %3903 = vmatpush.xpose.msk.msrb.mxu1 %vm548_vm0, %v910_v51 }
 0x33a   : > { %v1781_v56 = vpop.permute.xlu2 %1780 }
 0x33b   : > { %3904 = vmatmul.msk.f32.vlgmr.msrb.gmra.mxu1 %vm548_vm0, %v888_v53  ;;  %v1723_v57 = vpop.permute.xlu1 %1722  ;;  %1823 = vst.msk [vmem:[#allocation3 + $0xb0] sm:$0xff] %vm1560_vm1, %v1781_v56  ;;  %v962_v53 = vld [vmem:[#allocation2 + $0x1e0] sm:$0xff]  ;;  %v901_v56 = vld [vmem:[%s4395_s13 + $0x78] sm:$0xff]  ;;  %s4213_s13 = smov 124  }
 0x33c   : > { %3905 = vmatpush.xpose.msk.msra.mxu1 %vm548_vm0, %v917_v52  ;;  %1762 = vst.msk [vmem:[#allocation3 + $0x108] sm:$0xff] %vm1560_vm1, %v1723_v57  ;;  %4072 = vmatmul.msk.f32.gmra.mxu3 %vm2636_vm4, %v2624_v55  ;;  %v1719_v58 = vpop.permute.xlu0 %1718  ;;  %v1946_v52 = vld [vmem:[#allocation3 + $0x100] sm:$0xff] }
 0x33d   : > { %1760 = vst.msk [vmem:[#allocation3 + $0xc8] sm:$0xff] %vm1560_vm1, %v1719_v58  ;;  %v1906_v57 = vld [vmem:[%s4626_s15 + $0x40] sm:$0xff]  ;;  %v2632_v58 = vld [vmem:[%s4770_s22 + $0x68] sm:$0xff] }
 0x340   : > { %3906 = vmatpush.xpose.msk.msra.mxu1 %vm548_vm0, %v916_v54  ;;  %v1921_v54 = vld [vmem:[#allocation3 + $0x38] sm:$0xff] }
 0x342   : > { %v1783_v62 = vpop.permute.xlu2 %1782  ;;  %v1936_v31 = vld [vmem:[#allocation3 + $0xb0] sm:$0xff] }
 0x343   : > { %v1731_v1 = vpop.permute.xlu1 %1730  ;;  %1824 = vst.msk [vmem:[#allocation3 + $0xd0] sm:$0xff] %vm1560_vm1, %v1783_v62  ;;  %v1947_v47 = vld [vmem:[#allocation3 + $0x108] sm:$0xff] }
 0x344   : > { %3907 = vmatpush.xpose.msk.msra.mxu1 %vm548_vm0, %v915_v59  ;;  %1766 = vst.msk [vmem:[#allocation3 + $0x188] sm:$0xff] %vm1560_vm1, %v1731_v1  ;;  %4073 = vmatmul.msk.f32.gmra.mxu3 %vm2636_vm4, %v2625_v61  ;;  %v1729_v2 = vpop.permute.xlu0 %1728  ;;  %v1958_v1 = vld [vmem:[#allocation3 + $0x160] sm:$0xff] }
 0x345   : > { %1765 = vst.msk [vmem:[#allocation3 + $0x168] sm:$0xff] %vm1560_vm1, %v1729_v2  ;;  %v1918_v2 = vld [vmem:[#allocation3 + $0x20] sm:$0xff] }
 0x347   : > { %v4893_v49 = vpop.f32.mrf.mxu3 }
 0x348   : > { %3908 = vmatpush.xpose.msk.msra.mxu1 %vm548_vm0, %v914_v60 }
 0x34a   : > { %v1857_v5 = vpop.permute.xlu2 %1856 }
 0x34b   : > { %3909 = vmatmul.msk.f32.vlgmr.msra.gmra.mxu1 %vm548_vm0, %v889_v0  ;;  %v1777_v7 = vpop.permute.xlu1 %1776  ;;  %1893 = vst.msk [vmem:[#allocation3 + $0x178] sm:$0xff] %vm1560_vm1, %v1857_v5  ;;  %v2633_v0 = vld [vmem:[%s4770_s22 + $0x70] sm:$0xff]  ;;  %v1899_v5 = vld [vmem:[%s4626_s15 + $0x8] sm:$0xff] }
 0x34c   : > { %3920 = vmatpush.xpose.msk.msrb.mxu1 %vm548_vm0, %v929_v63  ;;  %1821 = vst.msk [vmem:[#allocation3 + $0x70] sm:$0xff] %vm1560_vm1, %v1777_v7  ;;  %4074 = vmatmul.msk.f32.gmra.mxu3 %vm2636_vm4, %v2626_v4  ;;  %v1773_v8 = vpop.permute.xlu0 %1772  ;;  %v1959_v62 = vld [vmem:[#allocation3 + $0x168] sm:$0xff]  ;;  %v1929_v4 = vld [vmem:[#allocation3 + $0x78] sm:$0xff] }
 0x34d   : > { %1819 = vst.msk [vmem:[#allocation3 + $0x30] sm:$0xff] %vm1560_vm1, %v1773_v8  ;;  %v1919_v63 = vld [vmem:[#allocation3 + $0x28] sm:$0xff] }
 0x350   : > { %3921 = vmatpush.xpose.msk.msrb.mxu1 %vm548_vm0, %v928_v3 }
 0x352   : > { %v1859_v13 = vpop.permute.xlu2 %1858  ;;  %v1961_v55 = vld [vmem:[#allocation3 + $0x178] sm:$0xff] }
 0x353   : > { %v1851_v14 = vpop.permute.xlu1 %1850  ;;  %1894 = vst.msk [vmem:[#allocation3 + $0x198] sm:$0xff] %vm1560_vm1, %v1859_v13  ;;  %v1928_v8 = vld [vmem:[#allocation3 + $0x70] sm:$0xff]  ;;  %v1970_v13 = vld [vmem:[#allocation3 + $0x1c0] sm:$0xff] }
 0x354   : > { %3922 = vmatpush.xpose.msk.msrb.mxu1 %vm548_vm0, %v927_v6  ;;  %1890 = vst.msk [vmem:[#allocation3 + $0x118] sm:$0xff] %vm1560_vm1, %v1851_v14  ;;  %4075 = vmatmul.msk.f32.gmra.mxu3 %vm2636_vm4, %v2627_v12  ;;  %v1845_v17 = vpop.permute.xlu0 %1844  ;;  %v1920_v60 = vld [vmem:[#allocation3 + $0x30] sm:$0xff]  ;;  %v1927_v12 = vld [vmem:[#allocation3 + $0x68] sm:$0xff] }
 0x355   : > { %1887 = vst.msk [vmem:[#allocation3 + $0xb8] sm:$0xff] %vm1560_vm1, %v1845_v17 }
 0x358   : > { %3923 = vmatpush.xpose.msk.msrb.mxu1 %vm548_vm0, %v926_v9  ;;  %v2634_v9 = vld [vmem:[%s4770_s22 + $0x78] sm:$0xff] }
 0x35a   : > { %v1799_v39 = vpop.permute.xlu2 %1798 }
 0x35b   : > { %3924 = vmatmul.msk.f32.vlgmr.msrb.gmra.mxu1 %vm548_vm0, %v892_v11  ;;  %v1853_v23 = vpop.permute.xlu1 %1852  ;;  %1832 = vst.msk [vmem:[#allocation3 + $0x1d0] sm:$0xff] %vm1560_vm1, %v1799_v39  ;;  %v1949_v42 = vld [vmem:[#allocation3 + $0x118] sm:$0xff]  ;;  %v1907_v39 = vld [vmem:[%s4626_s15 + $0x48] sm:$0xff] }
 0x35c   : > { %3935 = vmatpush.xpose.msk.msra.mxu1 %vm548_vm0, %v941_v10  ;;  %1891 = vst.msk [vmem:[#allocation3 + $0x138] sm:$0xff] %vm1560_vm1, %v1853_v23  ;;  %4076 = vmatmul.msk.f32.gmra.mxu3 %vm2636_vm4, %v2628_v21  ;;  %v1847_v26 = vpop.permute.xlu0 %1846  ;;  %v1937_v27 = vld [vmem:[#allocation3 + $0xb8] sm:$0xff]  ;;  %v1940_v23 = vld [vmem:[#allocation3 + $0xd0] sm:$0xff] }
 0x35d   : > { %1888 = vst.msk [vmem:[#allocation3 + $0xd8] sm:$0xff] %vm1560_vm1, %v1847_v26  ;;  %4011 = vmatpush.xpose.msk.msrb.mxu0 %vm1560_vm1, %v1937_v27  ;;  %v1939_v26 = vld [vmem:[#allocation3 + $0xc8] sm:$0xff] }
 0x35f   : > { %v4909_v61 = vpop.f32.mrf.mxu3 }
 0x360   : > { %3936 = vmatpush.xpose.msk.msra.mxu1 %vm548_vm0, %v940_v15  ;;  %v1926_v15 = vld [vmem:[#allocation3 + $0x60] sm:$0xff] }
 0x361   : > { %4012 = vmatpush.xpose.msk.msrb.mxu0 %vm1560_vm1, %v1936_v31  ;;  %v1904_v31 = vld [vmem:[%s4626_s15 + $0x30] sm:$0xff] }
 0x362   : > { %v1972_v7 = vld [vmem:[#allocation3 + $0x1d0] sm:$0xff] }
 0x363   : > { %v1793_v35 = vpop.permute.xlu1 %1792 }
 0x364   : > { %3937 = vmatpush.xpose.msk.msra.mxu1 %vm548_vm0, %v939_v20  ;;  %1829 = vst.msk [vmem:[#allocation3 + $0x170] sm:$0xff] %vm1560_vm1, %v1793_v35  ;;  %4077 = vmatmul.msk.f32.gmra.mxu3 %vm2636_vm4, %v2629_v33  ;;  %v1787_v36 = vpop.permute.xlu0 %1786  ;;  %v1941_v17 = vld [vmem:[#allocation3 + $0xd8] sm:$0xff]  ;;  %v1951_v35 = vld [vmem:[#allocation3 + $0x128] sm:$0xff] }
 0x365   : > { %1826 = vst.msk [vmem:[#allocation3 + $0x110] sm:$0xff] %vm1560_vm1, %v1787_v36  ;;  %4013 = vmatpush.xpose.msk.msrb.mxu0 %vm1560_vm1, %v1935_v37  ;;  %v1901_v20 = vld [vmem:[%s4626_s15 + $0x18] sm:$0xff]  ;;  %v1950_v37 = vld [vmem:[#allocation3 + $0x120] sm:$0xff] }
 0x368   : > { %3938 = vmatpush.xpose.msk.msra.mxu1 %vm548_vm0, %v938_v24 }
 0x369   : > { %4014 = vmatpush.xpose.msk.msrb.mxu0 %vm1560_vm1, %v1934_v40 }
 0x36b   : > { %3939 = vmatmul.msk.f32.vlgmr.msra.gmra.mxu1 %vm548_vm0, %v895_v30  ;;  %v1795_v19 = vpop.permute.xlu1 %1794  ;;  %v1960_v59 = vld [vmem:[#allocation3 + $0x170] sm:$0xff]  ;;  %v1953_v30 = vld [vmem:[#allocation3 + $0x138] sm:$0xff] }
 0x36c   : > { %3950 = vmatpush.xpose.msk.msrb.mxu1 %vm548_vm0, %v953_v29  ;;  %1830 = vst.msk [vmem:[#allocation3 + $0x190] sm:$0xff] %vm1560_vm1, %v1795_v19  ;;  %4078 = vmatmul.msk.f32.gmra.mxu3 %vm2636_vm4, %v2630_v43  ;;  %v1789_v46 = vpop.permute.xlu0 %1788  ;;  %v1948_v28 = vld [vmem:[#allocation3 + $0x110] sm:$0xff]  ;;  %v1938_v29 = vld [vmem:[#allocation3 + $0xc0] sm:$0xff] }
 0x36d   : > { %4026 = vmatpush.xpose.msk.msra.mxu0 %vm1560_vm1, %v1949_v42  ;;  %1827 = vst.msk [vmem:[#allocation3 + $0x130] sm:$0xff] %vm1560_vm1, %v1789_v46  ;;  %v1962_v42 = vld [vmem:[#allocation3 + $0x180] sm:$0xff] }
 0x36e   : > { %4015 = vmatmul.msk.f32.vlgmr.msrb.gmra.mxu0 %vm1560_vm1, %v1903_v18 }
 0x370   : > { %3951 = vmatpush.xpose.msk.msrb.mxu1 %vm548_vm0, %v952_v32 }
 0x371   : > { %4027 = vmatpush.xpose.msk.msra.mxu0 %vm1560_vm1, %v1948_v28  ;;  %v1974_v28 = vld [vmem:[#allocation3 + $0x1e0] sm:$0xff] }
 0x373   : > { %v1735_v50 = vpop.permute.xlu1 %1734 }
 0x374   : > { %3952 = vmatpush.xpose.msk.msrb.mxu1 %vm548_vm0, %v951_v38  ;;  %4079 = vmatmul.msk.f32.gmra.mxu3 %vm2636_vm4, %v2631_v48  ;;  %v1863_v51 = vpop.permute.xlu0 %1862  ;;  %1768 = vst.msk [vmem:[#allocation3 + $0x1c8] sm:$0xff] %vm1560_vm1, %v1735_v50  ;;  %v1952_v33 = vld [vmem:[#allocation3 + $0x130] sm:$0xff]  ;;  %v1965_v38 = vld [vmem:[#allocation3 + $0x198] sm:$0xff] }
 0x375   : > { %4028 = vmatpush.xpose.msk.msra.mxu0 %vm1560_vm1, %v1947_v47  ;;  %1896 = vst.msk [vmem:[#allocation3 + $0x1d8] sm:$0xff] %vm1560_vm1, %v1863_v51 }
 0x377   : > { %v4920_v6 = vpop.f32.mrf.mxu3 }
 0x378   : > { %3953 = vmatpush.xpose.msk.msrb.mxu1 %vm548_vm0, %v950_v41  ;;  %v1963_v41 = vld [vmem:[#allocation3 + $0x188] sm:$0xff] }
 0x379   : > { %4029 = vmatpush.xpose.msk.msra.mxu0 %vm1560_vm1, %v1946_v52 }
 0x37b   : > { %3954 = vmatmul.msk.f32.vlgmr.msrb.gmra.mxu1 %vm548_vm0, %v898_v44  ;;  %v1971_v11 = vld [vmem:[#allocation3 + $0x1c8] sm:$0xff] }
 0x37c   : > { %3965 = vmatpush.xpose.msk.msra.mxu1 %vm548_vm0, %v965_v16  ;;  %4030 = vmatmul.msk.f32.vlgmr.msra.gmra.mxu0 %vm1560_vm1, %v1906_v57  ;;  %v1973_v3 = vld [vmem:[#allocation3 + $0x1d8] sm:$0xff]  ;;  %v1865_v10 = vpop.permute.xlu0 %1864  ;;  %v1964_v16 = vld [vmem:[#allocation3 + $0x190] sm:$0xff] }
 0x37d   : > { %4041 = vmatpush.xpose.msk.msrb.mxu0 %vm1560_vm1, %v1961_v55  ;;  %4080 = vmatmul.msk.f32.gmra.mxu3 %vm2636_vm4, %v2632_v58  ;;  %1897 = vst.msk [vmem:[#allocation3 + $0x1f8] sm:$0xff] %vm1560_vm1, %v1865_v10 }
 0x380   : > { %3966 = vmatpush.xpose.msk.msra.mxu1 %vm548_vm0, %v964_v22 }
 0x381   : > { %4042 = vmatpush.xpose.msk.msrb.mxu0 %vm1560_vm1, %v1960_v59  ;;  %v1909_v59 = vld [vmem:[%s4626_s15 + $0x58] sm:$0xff] }
 0x384   : > { %3967 = vmatpush.xpose.msk.msra.mxu1 %vm548_vm0, %v963_v25  ;;  %v1801_v21 = vpop.permute.xlu0 %1800  ;;  %v1977_v43 = vld [vmem:[#allocation3 + $0x1f8] sm:$0xff] }
 0x385   : > { %4043 = vmatpush.xpose.msk.msrb.mxu0 %vm1560_vm1, %v1959_v62  ;;  %4081 = vmatmul.msk.f32.gmra.mxu3 %vm2636_vm4, %v2633_v0  ;;  %1833 = vst.msk [vmem:[#allocation3 + $0x1f0] sm:$0xff] %vm1560_vm1, %v1801_v21 }
 0x388   : > { %3968 = vmatpush.xpose.msk.msra.mxu1 %vm548_vm0, %v962_v53 }
 0x389   : > { %4044 = vmatpush.xpose.msk.msrb.mxu0 %vm1560_vm1, %v1958_v1 }
 0x38b   : > { %3969 = vmatmul.msk.f32.vlgmr.msra.gmra.mxu1 %vm548_vm0, %v901_v56 }
 0x38c   : > { %3991 = vmatpush.xpose.msk.msrb.mxu1 %vm1560_vm1, %v1921_v54  ;;  %v1737_v27 = vpop.permute.xlu0 %1736  ;;  %v1976_v44 = vld [vmem:[#allocation3 + $0x1f0] sm:$0xff]  ;;  %v1910_v54 = vld [vmem:[%s4626_s15 + $0x60] sm:$0xff]  ;;  %4045 = vmatmul.msk.f32.vlgmr.msrb.gmra.mxu0 %vm1560_vm1, %v1909_v59 }
 0x38d   : > { %4056 = vmatpush.xpose.msk.msra.mxu0 %vm1560_vm1, %v1973_v3  ;;  %4082 = vmatmul.msk.f32.gmra.mxu3 %vm2636_vm4, %v2634_v9  ;;  %1769 = vst.msk [vmem:[#allocation3 + $0x1e8] sm:$0xff] %vm1560_vm1, %v1737_v27  ;;  %v1913_v3 = vld [vmem:[%s4626_s15 + $0x78] sm:$0xff] }
 0x38f   : > { %v4931_v14 = vpop.f32.mrf.mxu3 }
 0x390   : > { %3992 = vmatpush.xpose.msk.msrb.mxu1 %vm1560_vm1, %v1920_v60 }
 0x391   : > { %4057 = vmatpush.xpose.msk.msra.mxu0 %vm1560_vm1, %v1972_v7  ;;  %v1912_v7 = vld [vmem:[%s4626_s15 + $0x70] sm:$0xff] }
 0x394   : > { %3993 = vmatpush.xpose.msk.msrb.mxu1 %vm1560_vm1, %v1919_v63  ;;  %v1975_v19 = vld [vmem:[#allocation3 + $0x1e8] sm:$0xff] }
 0x395   : > { %4058 = vmatpush.xpose.msk.msra.mxu0 %vm1560_vm1, %v1971_v11 }
 0x397   : > { %v2706_v24 = vpop.f32.mrf.mxu3 }
 0x398   : > { %3994 = vmatpush.xpose.msk.msrb.mxu1 %vm1560_vm1, %v1918_v2  ;;  %2754 = vst.msk [vmem:[#allocation4] sm:$0xff] %vm2636_vm4, %v2706_v24  ;;  %2914 = vrot.lane.b32.xlu1 %v2706_v24, %s4212_s28 }
 0x399   : > { %4059 = vmatpush.xpose.msk.msra.mxu0 %vm1560_vm1, %v1970_v13 }
 0x39b   : > { %3995 = vmatmul.msk.f32.vlgmr.msrb.gmra.mxu1 %vm1560_vm1, %v1899_v5 }
 0x39c   : > { %4001 = vmatpush.xpose.msk.msra.mxu1 %vm1560_vm1, %v1929_v4  ;;  %4060 = vmatmul.msk.f32.vlgmr.msra.gmra.mxu0 %vm1560_vm1, %v1912_v7 }
 0x39f   : > { %v2709_v32 = vpop.f32.mrf.mxu3 }
 0x3a0   : > { %4002 = vmatpush.xpose.msk.msra.mxu1 %vm1560_vm1, %v1928_v8  ;;  %2755 = vst.msk [vmem:[#allocation4 + $0x20] sm:$0xff] %vm2636_vm4, %v2709_v32  ;;  %2850 = vrot.lane.b32.xlu1 %v2706_v24, %s4210_s24 }
 0x3a1   : > { %2916 = vrot.lane.b32.xlu2 %v2709_v32, %s4212_s28  ;;  %2852 = vrot.lane.b32.xlu0 %v2709_v32, %s4210_s24 }
 0x3a4   : > { %4003 = vmatpush.xpose.msk.msra.mxu1 %vm1560_vm1, %v1927_v12 }
 0x3a7   : > { %v2712_v36 = vpop.f32.mrf.mxu3 }
 0x3a8   : > { %4004 = vmatpush.xpose.msk.msra.mxu1 %vm1560_vm1, %v1926_v15  ;;  %2756 = vst.msk [vmem:[#allocation4 + $0x40] sm:$0xff] %vm2636_vm4, %v2712_v36  ;;  %2786 = vrot.lane.b32.xlu1 %v2706_v24, %s4213_s13  ;;  %v998_v46 = vpop.f32.mrf.mxu1 }
 0x3a9   : > { %2788 = vrot.lane.b32.xlu0 %v2709_v32, %s4213_s13  ;;  %1527 = vst.msk [vmem:[%s4488_s27] sm:$0xff] %vm1526_vm2, %v998_v46  ;;  %v2994_v32 = vld [vmem:[#allocation4] sm:$0xff] }
 0x3ab   : > { %4005 = vmatmul.msk.f32.vlgmr.msra.gmra.mxu1 %vm1560_vm1, %v1901_v20 }
 0x3ac   : > { %4016 = vmatpush.xpose.msk.msrb.mxu1 %vm1560_vm1, %v1941_v17 }
 0x3af   : > { %v2715_v40 = vpop.f32.mrf.mxu3 }
 0x3b0   : > { %4017 = vmatpush.xpose.msk.msrb.mxu1 %vm1560_vm1, %v1940_v23  ;;  %2757 = vst.msk [vmem:[#allocation4 + $0x60] sm:$0xff] %vm2636_vm4, %v2715_v40  ;;  %2854 = vrot.lane.b32.xlu1 %v2712_v36, %s4210_s24 }
 0x3b1   : > { %2920 = vrot.lane.b32.xlu2 %v2715_v40, %s4212_s28  ;;  %2918 = vrot.lane.b32.xlu0 %v2712_v36, %s4212_s28 }
 0x3b4   : > { %4018 = vmatpush.xpose.msk.msrb.mxu1 %vm1560_vm1, %v1939_v26 }
 0x3b7   : > { %v2718_v18 = vpop.f32.mrf.mxu3 }
 0x3b8   : > { %4019 = vmatpush.xpose.msk.msrb.mxu1 %vm1560_vm1, %v1938_v29  ;;  %2758 = vst.msk [vmem:[#allocation4 + $0x80] sm:$0xff] %vm2636_vm4, %v2718_v18  ;;  %2790 = vrot.lane.b32.xlu1 %v2712_v36, %s4213_s13  ;;  %v1068_v47 = vpop.f32.mrf.mxu1 }
 0x3b9   : > { %2856 = vrot.lane.b32.xlu2 %v2715_v40, %s4210_s24  ;;  %2858 = vrot.lane.b32.xlu0 %v2718_v18, %s4210_s24  ;;  %1529 = vst.msk [vmem:[%s4488_s27 + $0x10] sm:$0xff] %vm1526_vm2, %v1068_v47 }
 0x3bb   : > { %4020 = vmatmul.msk.f32.vlgmr.msrb.gmra.mxu1 %vm1560_vm1, %v1904_v31 }
 0x3bc   : > { %4031 = vmatpush.xpose.msk.msra.mxu1 %vm1560_vm1, %v1953_v30 }
 0x3bf   : > { %v2721_v22 = vpop.f32.mrf.mxu3 }
 0x3c0   : > { %4032 = vmatpush.xpose.msk.msra.mxu1 %vm1560_vm1, %v1952_v33  ;;  %2759 = vst.msk [vmem:[#allocation4 + $0xa0] sm:$0xff] %vm2636_vm4, %v2721_v22  ;;  %2792 = vrot.lane.b32.xlu1 %v2715_v40, %s4213_s13 }
 0x3c1   : > { %2922 = vrot.lane.b32.xlu2 %v2718_v18, %s4212_s28  ;;  %2794 = vrot.lane.b32.xlu0 %v2718_v18, %s4213_s13 }
 0x3c4   : > { %4033 = vmatpush.xpose.msk.msra.mxu1 %vm1560_vm1, %v1951_v35  ;;  %v2998_v35 = vld [vmem:[#allocation4 + $0x20] sm:$0xff] }
 0x3c7   : > { %v2724_v25 = vpop.f32.mrf.mxu3 }
 0x3c8   : > { %4034 = vmatpush.xpose.msk.msra.mxu1 %vm1560_vm1, %v1950_v37  ;;  %2760 = vst.msk [vmem:[#allocation4 + $0xc0] sm:$0xff] %vm2636_vm4, %v2724_v25  ;;  %2860 = vrot.lane.b32.xlu1 %v2721_v22, %s4210_s24  ;;  %v1103_v50 = vpop.f32.mrf.mxu1 }
 0x3c9   : > { %2926 = vrot.lane.b32.xlu2 %v2724_v25, %s4212_s28  ;;  %2924 = vrot.lane.b32.xlu0 %v2721_v22, %s4212_s28  ;;  %1530 = vst.msk [vmem:[%s4488_s27 + $0x18] sm:$0xff] %vm1526_vm2, %v1103_v50  ;;  %v3010_v50 = vld [vmem:[#allocation4 + $0x80] sm:$0xff] }
 0x3cb   : > { %4035 = vmatmul.msk.f32.vlgmr.msra.gmra.mxu1 %vm1560_vm1, %v1907_v39 }
 0x3cc   : > { %4046 = vmatpush.xpose.msk.msrb.mxu1 %vm1560_vm1, %v1965_v38 }
 0x3cf   : > { %v2727_v48 = vpop.f32.mrf.mxu3 }
 0x3d0   : > { %4047 = vmatpush.xpose.msk.msrb.mxu1 %vm1560_vm1, %v1964_v16  ;;  %2761 = vst.msk [vmem:[#allocation4 + $0xe0] sm:$0xff] %vm2636_vm4, %v2727_v48  ;;  %2796 = vrot.lane.b32.xlu1 %v2721_v22, %s4213_s13 }
 0x3d1   : > { %2862 = vrot.lane.b32.xlu2 %v2724_v25, %s4210_s24  ;;  %2864 = vrot.lane.b32.xlu0 %v2727_v48, %s4210_s24 }
 0x3d4   : > { %4048 = vmatpush.xpose.msk.msrb.mxu1 %vm1560_vm1, %v1963_v41 }
 0x3d7   : > { %v2730_v51 = vpop.f32.mrf.mxu3 }
 0x3d8   : > { %4049 = vmatpush.xpose.msk.msrb.mxu1 %vm1560_vm1, %v1962_v42  ;;  %2762 = vst.msk [vmem:[#allocation4 + $0x100] sm:$0xff] %vm2636_vm4, %v2730_v51  ;;  %2798 = vrot.lane.b32.xlu1 %v2724_v25, %s4213_s13  ;;  %v1208_v52 = vpop.f32.mrf.mxu1 }
 0x3d9   : > { %2928 = vrot.lane.b32.xlu2 %v2727_v48, %s4212_s28  ;;  %2800 = vrot.lane.b32.xlu0 %v2727_v48, %s4213_s13  ;;  %1533 = vst.msk [vmem:[%s4488_s27 + $0x30] sm:$0xff] %vm1526_vm2, %v1208_v52 }
 0x3db   : > { %4050 = vmatmul.msk.f32.vlgmr.msrb.gmra.mxu1 %vm1560_vm1, %v1910_v54 }
 0x3dc   : > { %4061 = vmatpush.xpose.msk.msra.mxu1 %vm1560_vm1, %v1977_v43 }
 0x3df   : > { %v2733_v53 = vpop.f32.mrf.mxu3 }
 0x3e0   : > { %4062 = vmatpush.xpose.msk.msra.mxu1 %vm1560_vm1, %v1976_v44  ;;  %2763 = vst.msk [vmem:[#allocation4 + $0x120] sm:$0xff] %vm2636_vm4, %v2733_v53  ;;  %2866 = vrot.lane.b32.xlu1 %v2730_v51, %s4210_s24 }
 0x3e1   : > { %2932 = vrot.lane.b32.xlu2 %v2733_v53, %s4212_s28  ;;  %2930 = vrot.lane.b32.xlu0 %v2730_v51, %s4212_s28 }
 0x3e4   : > { %4063 = vmatpush.xpose.msk.msra.mxu1 %vm1560_vm1, %v1975_v19 }
 0x3e7   : > { %v2736_v56 = vpop.f32.mrf.mxu3 }
 0x3e8   : > { %4064 = vmatpush.xpose.msk.msra.mxu1 %vm1560_vm1, %v1974_v28  ;;  %v1313_v55 = vpop.f32.mrf.mxu1  ;;  %2764 = vst.msk [vmem:[#allocation4 + $0x140] sm:$0xff] %vm2636_vm4, %v2736_v56  ;;  %2802 = vrot.lane.b32.xlu1 %v2730_v51, %s4213_s13 }
 0x3e9   : > { %1536 = vst.msk [vmem:[%s4488_s27 + $0x48] sm:$0xff] %vm1526_vm2, %v1313_v55  ;;  %2868 = vrot.lane.b32.xlu2 %v2733_v53, %s4210_s24  ;;  %2870 = vrot.lane.b32.xlu0 %v2736_v56, %s4210_s24 }
 0x3eb   : > { %4065 = vmatmul.msk.f32.vlgmr.msra.gmra.mxu1 %vm1560_vm1, %v1913_v3 }
 0x3ef   : > { %v2739_v58 = vpop.f32.mrf.mxu3 }
 0x3f0   : > { %2765 = vst.msk [vmem:[#allocation4 + $0x160] sm:$0xff] %vm2636_vm4, %v2739_v58  ;;  %2804 = vrot.lane.b32.xlu1 %v2733_v53, %s4213_s13 }
 0x3f1   : > { %2934 = vrot.lane.b32.xlu2 %v2736_v56, %s4212_s28  ;;  %2806 = vrot.lane.b32.xlu0 %v2736_v56, %s4213_s13 }
 0x3f7   : > { %v2742_v62 = vpop.f32.mrf.mxu3 }
 0x3f8   : > { %v1418_v57 = vpop.f32.mrf.mxu1  ;;  %2766 = vst.msk [vmem:[#allocation4 + $0x180] sm:$0xff] %vm2636_vm4, %v2742_v62  ;;  %2872 = vrot.lane.b32.xlu1 %v2739_v58, %s4210_s24 }
 0x3f9   : > { %1539 = vst.msk [vmem:[%s4488_s27 + $0x60] sm:$0xff] %vm1526_vm2, %v1418_v57  ;;  %2938 = vrot.lane.b32.xlu2 %v2742_v62, %s4212_s28  ;;  %2936 = vrot.lane.b32.xlu0 %v2739_v58, %s4212_s28 }
 0x3fb   : > { %v2917_v63 = vpop.permute.xlu2 %2916 }
 0x3fc   : > { %2963 = vst.msk [vmem:[#allocation4 + $0x38] sm:$0xff] %vm2636_vm4, %v2917_v63 }
 0x400   : > { %v2745_v0 = vpop.f32.mrf.mxu3  ;;  %2808 = vrot.lane.b32.xlu1 %v2739_v58, %s4213_s13 }
 0x401   : > { %2767 = vst.msk [vmem:[#allocation4 + $0x1a0] sm:$0xff] %vm2636_vm4, %v2745_v0  ;;  %2874 = vrot.lane.b32.xlu2 %v2742_v62, %s4210_s24 }
 0x403   : > { %v3001_v1 = vld [vmem:[#allocation4 + $0x38] sm:$0xff] }
 0x404   : > { %4088 = vmatpush.xpose.msk.msrb.mxu1 %vm2636_vm4, %v3001_v1 }
 0x408   : > { %v1523_v60 = vpop.f32.mrf.mxu1  ;;  %v2748_v2 = vpop.f32.mrf.mxu3  ;;  %2810 = vrot.lane.b32.xlu1 %v2742_v62, %s4213_s13 }
 0x409   : > { %1542 = vst.msk [vmem:[%s4488_s27 + $0x78] sm:$0xff] %vm1526_vm2, %v1523_v60  ;;  %2940 = vrot.lane.b32.xlu2 %v2745_v0, %s4212_s28  ;;  %2942 = vrot.lane.b32.xlu0 %v2748_v2, %s4212_s28 }
 0x40a   : > { %2768 = vst.msk [vmem:[#allocation4 + $0x1c0] sm:$0xff] %vm2636_vm4, %v2748_v2  ;;  %v2915_v4 = vpop.permute.xlu1 %2914 }
 0x40b   : > { %v2921_v5 = vpop.permute.xlu2 %2920  ;;  %2962 = vst.msk [vmem:[#allocation4 + $0x18] sm:$0xff] %vm2636_vm4, %v2915_v4 }
 0x40c   : > { %2965 = vst.msk [vmem:[#allocation4 + $0x78] sm:$0xff] %vm2636_vm4, %v2921_v5 }
 0x410   : > { %v2751_v8 = vpop.f32.mrf.mxu3 }
 0x411   : > { %2769 = vst.msk [vmem:[#allocation4 + $0x1e0] sm:$0xff] %vm2636_vm4, %v2751_v8  ;;  %2816 = vrot.lane.b32.xlu1 %v2751_v8, %s4213_s13  ;;  %2944 = vrot.lane.b32.xlu2 %v2751_v8, %s4212_s28 }
 0x412   : > { %2878 = vrot.lane.b32.xlu0 %v2748_v2, %s4210_s24  ;;  %v2851_v9 = vpop.permute.xlu1 %2850  ;;  %v2997_v11 = vld [vmem:[#allocation4 + $0x18] sm:$0xff] }
 0x413   : > { %v2857_v10 = vpop.permute.xlu2 %2856  ;;  %2898 = vst.msk [vmem:[#allocation4 + $0x10] sm:$0xff] %vm2636_vm4, %v2851_v9  ;;  %v2853_v12 = vpop.permute.xlu0 %2852  ;;  %4083 = vmatpush.xpose.msk.msrb.mxu0 %vm2636_vm4, %v2997_v11  ;;  %v3009_v13 = vld [vmem:[#allocation4 + $0x78] sm:$0xff]  ;;  %v3022_v11 = vld [vmem:[#allocation4 + $0xe0] sm:$0xff] }
 0x414   : > { %2901 = vst.msk [vmem:[#allocation4 + $0x70] sm:$0xff] %vm2636_vm4, %v2857_v10  ;;  %4098 = vmatpush.xpose.msk.msra.mxu2 %vm2636_vm4, %v3009_v13 }
 0x415   : > { %2899 = vst.msk [vmem:[#allocation4 + $0x30] sm:$0xff] %vm2636_vm4, %v2853_v12 }
 0x419   : > { %2812 = vrot.lane.b32.xlu1 %v2745_v0, %s4213_s13  ;;  %2880 = vrot.lane.b32.xlu2 %v2751_v8, %s4210_s24  ;;  %v3018_v8 = vld [vmem:[#allocation4 + $0xc0] sm:$0xff] }
 0x41a   : > { %2554 = vrot.lane.b32.xlu0 %v4866_v34, %s4214_s23  ;;  %v2787_v15 = vpop.permute.xlu1 %2786  ;;  %v2996_v20 = vld [vmem:[#allocation4 + $0x10] sm:$0xff]  ;;  %v2045_v34 = vpop.f32.mrf.mxu1 }
 0x41b   : > { %v2923_v17 = vpop.permute.xlu2 %2922  ;;  %2834 = vst.msk [vmem:[#allocation4 + $0x8] sm:$0xff] %vm2636_vm4, %v2787_v15  ;;  %v2789_v21 = vpop.permute.xlu0 %2788  ;;  %4084 = vmatpush.xpose.msk.msrb.mxu0 %vm2636_vm4, %v2996_v20  ;;  %v3008_v23 = vld [vmem:[#allocation4 + $0x70] sm:$0xff] }
 0x41c   : > { %2966 = vst.msk [vmem:[#allocation4 + $0x98] sm:$0xff] %vm2636_vm4, %v2923_v17  ;;  %v3000_v24 = vld [vmem:[#allocation4 + $0x30] sm:$0xff]  ;;  %4099 = vmatpush.xpose.msk.msra.mxu2 %vm2636_vm4, %v3008_v23 }
 0x41d   : > { %2835 = vst.msk [vmem:[#allocation4 + $0x28] sm:$0xff] %vm2636_vm4, %v2789_v21  ;;  %4089 = vmatpush.xpose.msk.msrb.mxu1 %vm2636_vm4, %v3000_v24 }
 0x421   : > { %2876 = vrot.lane.b32.xlu2 %v2745_v0, %s4210_s24  ;;  %2556 = vrot.lane.b32.xlu1 %v2045_v34, %s4214_s23  ;;  %s5071_s24 = scalar_lea.vmem %s5308_s8, %s4286_s20  ;;  %v3014_v0 = vld [vmem:[#allocation4 + $0xa0] sm:$0xff]  ;;  %s4215_s20 = smov 64  }
 0x422   : > { %v2855_v26 = vpop.permute.xlu1 %2854  ;;  %v2995_v29 = vld [vmem:[#allocation4 + $0x8] sm:$0xff]  ;;  %v2978_v33 = vld [vmem:[%s5071_s24] sm:$0xff]  ;;  %v2980_v25 = vld [vmem:[%s5071_s24 + $0x10] sm:$0xff] }
 0x423   : > { %v2927_v27 = vpop.permute.xlu2 %2926  ;;  %2900 = vst.msk [vmem:[#allocation4 + $0x50] sm:$0xff] %vm2636_vm4, %v2855_v26  ;;  %v2919_v30 = vpop.permute.xlu0 %2918  ;;  %4085 = vmatpush.xpose.msk.msrb.mxu0 %vm2636_vm4, %v2995_v29  ;;  %v3013_v36 = vld [vmem:[#allocation4 + $0x98] sm:$0xff]  ;;  %v2979_v37 = vld [vmem:[%s5071_s24 + $0x8] sm:$0xff]  ;;  %v2982_v52 = vld [vmem:[%s5071_s24 + $0x20] sm:$0xff] }
 0x424   : > { %2968 = vst.msk [vmem:[#allocation4 + $0xd8] sm:$0xff] %vm2636_vm4, %v2927_v27  ;;  %v2999_v31 = vld [vmem:[#allocation4 + $0x28] sm:$0xff]  ;;  %v2981_v48 = vld [vmem:[%s5071_s24 + $0x18] sm:$0xff]  ;;  %v2984_v10 = vld [vmem:[%s5071_s24 + $0x30] sm:$0xff] }
 0x425   : > { %2964 = vst.msk [vmem:[#allocation4 + $0x58] sm:$0xff] %vm2636_vm4, %v2919_v30  ;;  %4090 = vmatpush.xpose.msk.msrb.mxu1 %vm2636_vm4, %v2999_v31  ;;  %v2983_v7 = vld [vmem:[%s5071_s24 + $0x28] sm:$0xff]  ;;  %v2985_v13 = vld [vmem:[%s5071_s24 + $0x38] sm:$0xff]  ;;  %v3026_v31 = vld [vmem:[#allocation4 + $0x100] sm:$0xff] }
 0x427   : > { %4086 = vmatpush.xpose.msk.msrb.mxu0 %vm2636_vm4, %v2994_v32  ;;  %v2986_v32 = vld [vmem:[%s5071_s24 + $0x40] sm:$0xff] }
 0x429   : > { %2814 = vrot.lane.b32.xlu2 %v2748_v2, %s4213_s13  ;;  %2562 = vrot.lane.b32.xlu1 %v4893_v49, %s4214_s23 }
 0x42a   : > { %4091 = vmatpush.xpose.msk.msrb.mxu1 %vm2636_vm4, %v2998_v35  ;;  %v2791_v38 = vpop.permute.xlu1 %2790  ;;  %4087 = vmatmul.msk.f32.vlgmr.msrb.gmra.mxu0 %vm2636_vm4, %v2978_v33  ;;  %v3004_v49 = vld [vmem:[#allocation4 + $0x50] sm:$0xff] }
 0x42b   : > { %v2863_v39 = vpop.permute.xlu2 %2862  ;;  %2836 = vst.msk [vmem:[#allocation4 + $0x48] sm:$0xff] %vm2636_vm4, %v2791_v38  ;;  %v2859_v16 = vpop.permute.xlu0 %2858  ;;  %v3021_v47 = vld [vmem:[#allocation4 + $0xd8] sm:$0xff] }
 0x42c   : > { %2904 = vst.msk [vmem:[#allocation4 + $0xd0] sm:$0xff] %vm2636_vm4, %v2863_v39  ;;  %v3005_v40 = vld [vmem:[#allocation4 + $0x58] sm:$0xff]  ;;  %v3030_v39 = vld [vmem:[#allocation4 + $0x120] sm:$0xff] }
 0x42d   : > { %4092 = vmatmul.msk.f32.vlgmr.msrb.gmra.mxu1 %vm2636_vm4, %v2979_v37  ;;  %2902 = vst.msk [vmem:[#allocation4 + $0x90] sm:$0xff] %vm2636_vm4, %v2859_v16  ;;  %4093 = vmatpush.xpose.msk.msra.mxu0 %vm2636_vm4, %v3005_v40  ;;  %v2987_v40 = vld [vmem:[%s5071_s24 + $0x48] sm:$0xff] }
 0x42e   : > { %4103 = vmatpush.xpose.msk.msra.mxu1 %vm2636_vm4, %v3013_v36 }
 0x431   : > { %2558 = vrot.lane.b32.xlu2 %v4881_v45, %s4214_s23  ;;  %2568 = vrot.lane.b32.xlu1 %v4909_v61, %s4214_s23  ;;  %v3002_v45 = vld [vmem:[#allocation4 + $0x40] sm:$0xff] }
 0x432   : > { %4094 = vmatpush.xpose.msk.msra.mxu0 %vm2636_vm4, %v3004_v49  ;;  %v2793_v41 = vpop.permute.xlu1 %2792  ;;  %v3003_v43 = vld [vmem:[#allocation4 + $0x48] sm:$0xff]  ;;  %v3034_v49 = vld [vmem:[#allocation4 + $0x140] sm:$0xff] }
 0x433   : > { %v2929_v42 = vpop.permute.xlu2 %2928  ;;  %2837 = vst.msk [vmem:[#allocation4 + $0x68] sm:$0xff] %vm2636_vm4, %v2793_v41  ;;  %v2795_v18 = vpop.permute.xlu0 %2794  ;;  %v3020_v56 = vld [vmem:[#allocation4 + $0xd0] sm:$0xff] }
 0x434   : > { %2969 = vst.msk [vmem:[#allocation4 + $0xf8] sm:$0xff] %vm2636_vm4, %v2929_v42  ;;  %v3012_v44 = vld [vmem:[#allocation4 + $0x90] sm:$0xff] }
 0x435   : > { %2838 = vst.msk [vmem:[#allocation4 + $0x88] sm:$0xff] %vm2636_vm4, %v2795_v18  ;;  %4104 = vmatpush.xpose.msk.msra.mxu1 %vm2636_vm4, %v3012_v44 }
 0x436   : > { %4095 = vmatpush.xpose.msk.msra.mxu0 %vm2636_vm4, %v3003_v43 }
 0x439   : > { %2574 = vrot.lane.b32.xlu1 %v4920_v6, %s4214_s23  ;;  %v3006_v6 = vld [vmem:[#allocation4 + $0x60] sm:$0xff] }
 0x43a   : > { %4096 = vmatpush.xpose.msk.msra.mxu0 %vm2636_vm4, %v3002_v45  ;;  %v2861_v61 = vpop.permute.xlu1 %2860  ;;  %v3007_v22 = vld [vmem:[#allocation4 + $0x68] sm:$0xff] }
 0x43b   : > { %v2933_v19 = vpop.permute.xlu2 %2932  ;;  %2903 = vst.msk [vmem:[#allocation4 + $0xb0] sm:$0xff] %vm2636_vm4, %v2861_v61  ;;  %v2925_v46 = vpop.permute.xlu0 %2924  ;;  %4100 = vmatpush.xpose.msk.msra.mxu2 %vm2636_vm4, %v3007_v22  ;;  %v3025_v51 = vld [vmem:[#allocation4 + $0xf8] sm:$0xff] }
 0x43c   : > { %2971 = vst.msk [vmem:[#allocation4 + $0x138] sm:$0xff] %vm2636_vm4, %v2933_v19  ;;  %v3011_v28 = vld [vmem:[#allocation4 + $0x88] sm:$0xff] }
 0x43d   : > { %2967 = vst.msk [vmem:[#allocation4 + $0xb8] sm:$0xff] %vm2636_vm4, %v2925_v46  ;;  %4105 = vmatpush.xpose.msk.msra.mxu1 %vm2636_vm4, %v3011_v28  ;;  %4097 = vmatmul.msk.f32.vlgmr.msra.gmra.mxu0 %vm2636_vm4, %v2980_v25  ;;  %v3038_v28 = vld [vmem:[#allocation4 + $0x160] sm:$0xff]  ;;  %v2989_v25 = vld [vmem:[%s5071_s24 + $0x58] sm:$0xff] }
 0x43f   : > { %4101 = vmatpush.xpose.msk.msra.mxu2 %vm2636_vm4, %v3006_v6 }
 0x441   : > { %2580 = vrot.lane.b32.xlu1 %v4931_v14, %s4214_s23  ;;  %4106 = vmatpush.xpose.msk.msra.mxu1 %vm2636_vm4, %v3010_v50 }
 0x442   : > { %v2797_v53 = vpop.permute.xlu1 %2796  ;;  %4102 = vmatmul.msk.f32.vlgmr.msra.gmra.mxu2 %vm2636_vm4, %v2981_v48  ;;  %v3016_v14 = vld [vmem:[#allocation4 + $0xb0] sm:$0xff] }
 0x443   : > { %4113 = vmatpush.xpose.msk.msrb.mxu2 %vm2636_vm4, %v3021_v47  ;;  %v2869_v54 = vpop.permute.xlu2 %2868  ;;  %2839 = vst.msk [vmem:[#allocation4 + $0xa8] sm:$0xff] %vm2636_vm4, %v2797_v53  ;;  %v2865_v55 = vpop.permute.xlu0 %2864  ;;  %v3033_v9 = vld [vmem:[#allocation4 + $0x138] sm:$0xff]  ;;  %v3042_v53 = vld [vmem:[#allocation4 + $0x180] sm:$0xff] }
 0x444   : > { %2907 = vst.msk [vmem:[#allocation4 + $0x130] sm:$0xff] %vm2636_vm4, %v2869_v54  ;;  %v3017_v57 = vld [vmem:[#allocation4 + $0xb8] sm:$0xff]  ;;  %4107 = vmatmul.msk.f32.vlgmr.msra.gmra.mxu1 %vm2636_vm4, %v2982_v52 }
 0x445   : > { %4118 = vmatpush.xpose.msk.msrb.mxu1 %vm2636_vm4, %v3025_v51  ;;  %2905 = vst.msk [vmem:[#allocation4 + $0xf0] sm:$0xff] %vm2636_vm4, %v2865_v55  ;;  %4108 = vmatpush.xpose.msk.msrb.mxu0 %vm2636_vm4, %v3017_v57  ;;  %v2990_v55 = vld [vmem:[%s5071_s24 + $0x60] sm:$0xff] }
 0x447   : > { %4114 = vmatpush.xpose.msk.msrb.mxu2 %vm2636_vm4, %v3020_v56 }
 0x449   : > { %4109 = vmatpush.xpose.msk.msrb.mxu0 %vm2636_vm4, %v3016_v14 }
 0x44a   : > { %v2799_v58 = vpop.permute.xlu1 %2798  ;;  %v3015_v60 = vld [vmem:[#allocation4 + $0xa8] sm:$0xff] }
 0x44b   : > { %v2935_v59 = vpop.permute.xlu2 %2934  ;;  %2840 = vst.msk [vmem:[#allocation4 + $0xc8] sm:$0xff] %vm2636_vm4, %v2799_v58  ;;  %v2801_v62 = vpop.permute.xlu0 %2800  ;;  %v3032_v21 = vld [vmem:[#allocation4 + $0x130] sm:$0xff] }
 0x44c   : > { %2972 = vst.msk [vmem:[#allocation4 + $0x158] sm:$0xff] %vm2636_vm4, %v2935_v59  ;;  %v3024_v63 = vld [vmem:[#allocation4 + $0xf0] sm:$0xff] }
 0x44d   : > { %2841 = vst.msk [vmem:[#allocation4 + $0xe8] sm:$0xff] %vm2636_vm4, %v2801_v62  ;;  %4110 = vmatpush.xpose.msk.msrb.mxu0 %vm2636_vm4, %v3015_v60  ;;  %4119 = vmatpush.xpose.msk.msrb.mxu1 %vm2636_vm4, %v3024_v63  ;;  %v2988_v62 = vld [vmem:[%s5071_s24 + $0x50] sm:$0xff] }
 0x451   : > { %4111 = vmatpush.xpose.msk.msrb.mxu0 %vm2636_vm4, %v3014_v0 }
 0x452   : > { %v2867_v1 = vpop.permute.xlu1 %2866  ;;  %v3019_v3 = vld [vmem:[#allocation4 + $0xc8] sm:$0xff] }
 0x453   : > { %v2939_v2 = vpop.permute.xlu2 %2938  ;;  %2906 = vst.msk [vmem:[#allocation4 + $0x110] sm:$0xff] %vm2636_vm4, %v2867_v1  ;;  %v2931_v4 = vpop.permute.xlu0 %2930  ;;  %4115 = vmatpush.xpose.msk.msrb.mxu2 %vm2636_vm4, %v3019_v3  ;;  %v3037_v12 = vld [vmem:[#allocation4 + $0x158] sm:$0xff]  ;;  %v3054_v3 = vld [vmem:[#allocation4 + $0x1e0] sm:$0xff] }
 0x454   : > { %2974 = vst.msk [vmem:[#allocation4 + $0x198] sm:$0xff] %vm2636_vm4, %v2939_v2  ;;  %v3023_v5 = vld [vmem:[#allocation4 + $0xe8] sm:$0xff]  ;;  %4112 = vmatmul.msk.f32.vlgmr.msrb.gmra.mxu0 %vm2636_vm4, %v2983_v7  ;;  %v2185_v2 = vpop.f32.mrf.mxu0  ;;  %v2993_v7 = vld [vmem:[%s5071_s24 + $0x78] sm:$0xff] }
 0x455   : > { %2970 = vst.msk [vmem:[#allocation4 + $0x118] sm:$0xff] %vm2636_vm4, %v2931_v4  ;;  %4120 = vmatpush.xpose.msk.msrb.mxu1 %vm2636_vm4, %v3023_v5  ;;  %2564 = vrot.lane.b32.xlu2 %v2185_v2, %s4214_s23  ;;  %v2115_v4 = vpop.f32.mrf.mxu1  ;;  %v3050_v5 = vld [vmem:[#allocation4 + $0x1c0] sm:$0xff] }
 0x456   : > { %2560 = vrot.lane.b32.xlu0 %v2115_v4, %s4214_s23 }
 0x457   : > { %4116 = vmatpush.xpose.msk.msrb.mxu2 %vm2636_vm4, %v3018_v8  ;;  %v2992_v8 = vld [vmem:[%s5071_s24 + $0x70] sm:$0xff] }
 0x459   : > { %4121 = vmatpush.xpose.msk.msrb.mxu1 %vm2636_vm4, %v3022_v11 }
 0x45a   : > { %v2803_v15 = vpop.permute.xlu1 %2802  ;;  %4117 = vmatmul.msk.f32.vlgmr.msrb.gmra.mxu2 %vm2636_vm4, %v2984_v10  ;;  %v3028_v24 = vld [vmem:[#allocation4 + $0x110] sm:$0xff]  ;;  %v2991_v10 = vld [vmem:[%s5071_s24 + $0x68] sm:$0xff] }
 0x45b   : > { %4128 = vmatpush.xpose.msk.msra.mxu2 %vm2636_vm4, %v3033_v9  ;;  %v2875_v17 = vpop.permute.xlu2 %2874  ;;  %2842 = vst.msk [vmem:[#allocation4 + $0x108] sm:$0xff] %vm2636_vm4, %v2803_v15  ;;  %v2871_v20 = vpop.permute.xlu0 %2870  ;;  %v3045_v16 = vld [vmem:[#allocation4 + $0x198] sm:$0xff]  ;;  %v3046_v9 = vld [vmem:[#allocation4 + $0x1a0] sm:$0xff] }
 0x45c   : > { %2910 = vst.msk [vmem:[#allocation4 + $0x190] sm:$0xff] %vm2636_vm4, %v2875_v17  ;;  %v3029_v23 = vld [vmem:[#allocation4 + $0x118] sm:$0xff]  ;;  %4122 = vmatmul.msk.f32.vlgmr.msrb.gmra.mxu1 %vm2636_vm4, %v2985_v13 }
 0x45d   : > { %4133 = vmatpush.xpose.msk.msra.mxu1 %vm2636_vm4, %v3037_v12  ;;  %2908 = vst.msk [vmem:[#allocation4 + $0x150] sm:$0xff] %vm2636_vm4, %v2871_v20  ;;  %4123 = vmatpush.xpose.msk.msra.mxu0 %vm2636_vm4, %v3029_v23  ;;  %v2290_v12 = vpop.f32.mrf.mxu0  ;;  %v2220_v13 = vpop.f32.mrf.mxu1 }
 0x45e   : > { %2570 = vrot.lane.b32.xlu2 %v2290_v12, %s4214_s23  ;;  %2566 = vrot.lane.b32.xlu0 %v2220_v13, %s4214_s23 }
 0x45f   : > { %4129 = vmatpush.xpose.msk.msra.mxu2 %vm2636_vm4, %v3032_v21 }
 0x461   : > { %4124 = vmatpush.xpose.msk.msra.mxu0 %vm2636_vm4, %v3028_v24 }
 0x462   : > { %v2805_v34 = vpop.permute.xlu1 %2804  ;;  %v3027_v27 = vld [vmem:[#allocation4 + $0x108] sm:$0xff] }
 0x463   : > { %v2941_v26 = vpop.permute.xlu2 %2940  ;;  %2843 = vst.msk [vmem:[#allocation4 + $0x128] sm:$0xff] %vm2636_vm4, %v2805_v34  ;;  %v2807_v29 = vpop.permute.xlu0 %2806  ;;  %v3044_v18 = vld [vmem:[#allocation4 + $0x190] sm:$0xff] }
 0x464   : > { %2975 = vst.msk [vmem:[#allocation4 + $0x1b8] sm:$0xff] %vm2636_vm4, %v2941_v26  ;;  %v3036_v30 = vld [vmem:[#allocation4 + $0x150] sm:$0xff] }
 0x465   : > { %2844 = vst.msk [vmem:[#allocation4 + $0x148] sm:$0xff] %vm2636_vm4, %v2807_v29  ;;  %4125 = vmatpush.xpose.msk.msra.mxu0 %vm2636_vm4, %v3027_v27  ;;  %4134 = vmatpush.xpose.msk.msra.mxu1 %vm2636_vm4, %v3036_v30  ;;  %v2395_v17 = vpop.f32.mrf.mxu0  ;;  %v2325_v20 = vpop.f32.mrf.mxu1 }
 0x466   : > { %2576 = vrot.lane.b32.xlu2 %v2395_v17, %s4214_s23  ;;  %2572 = vrot.lane.b32.xlu0 %v2325_v20, %s4214_s23 }
 0x469   : > { %4126 = vmatpush.xpose.msk.msra.mxu0 %vm2636_vm4, %v3026_v31 }
 0x46a   : > { %v2873_v33 = vpop.permute.xlu1 %2872  ;;  %v3031_v36 = vld [vmem:[#allocation4 + $0x128] sm:$0xff] }
 0x46b   : > { %v2945_v35 = vpop.permute.xlu2 %2944  ;;  %2909 = vst.msk [vmem:[#allocation4 + $0x170] sm:$0xff] %vm2636_vm4, %v2873_v33  ;;  %v2937_v37 = vpop.permute.xlu0 %2936  ;;  %4130 = vmatpush.xpose.msk.msra.mxu2 %vm2636_vm4, %v3031_v36  ;;  %v3049_v41 = vld [vmem:[#allocation4 + $0x1b8] sm:$0xff] }
 0x46c   : > { %2977 = vst.msk [vmem:[#allocation4 + $0x1f8] sm:$0xff] %vm2636_vm4, %v2945_v35  ;;  %v3035_v38 = vld [vmem:[#allocation4 + $0x148] sm:$0xff]  ;;  %4127 = vmatmul.msk.f32.vlgmr.msra.gmra.mxu0 %vm2636_vm4, %v2986_v32 }
 0x46d   : > { %2973 = vst.msk [vmem:[#allocation4 + $0x178] sm:$0xff] %vm2636_vm4, %v2937_v37  ;;  %4135 = vmatpush.xpose.msk.msra.mxu1 %vm2636_vm4, %v3035_v38  ;;  %v2500_v23 = vpop.f32.mrf.mxu0  ;;  %v2430_v24 = vpop.f32.mrf.mxu1 }
 0x46e   : > { %2582 = vrot.lane.b32.xlu2 %v2500_v23, %s4214_s23  ;;  %2578 = vrot.lane.b32.xlu0 %v2430_v24, %s4214_s23 }
 0x46f   : > { %4131 = vmatpush.xpose.msk.msra.mxu2 %vm2636_vm4, %v3030_v39 }
 0x471   : > { %4136 = vmatpush.xpose.msk.msra.mxu1 %vm2636_vm4, %v3034_v49 }
 0x472   : > { %v2809_v42 = vpop.permute.xlu1 %2808  ;;  %4132 = vmatmul.msk.f32.vlgmr.msra.gmra.mxu2 %vm2636_vm4, %v2987_v40  ;;  %v3040_v45 = vld [vmem:[#allocation4 + $0x170] sm:$0xff] }
 0x473   : > { %4143 = vmatpush.xpose.msk.msrb.mxu2 %vm2636_vm4, %v3045_v16  ;;  %v2881_v43 = vpop.permute.xlu2 %2880  ;;  %2845 = vst.msk [vmem:[#allocation4 + $0x168] sm:$0xff] %vm2636_vm4, %v2809_v42  ;;  %v3057_v54 = vld [vmem:[#allocation4 + $0x1f8] sm:$0xff] }
 0x474   : > { %2913 = vst.msk [vmem:[#allocation4 + $0x1f0] sm:$0xff] %vm2636_vm4, %v2881_v43  ;;  %v3041_v44 = vld [vmem:[#allocation4 + $0x178] sm:$0xff]  ;;  %4137 = vmatmul.msk.f32.vlgmr.msra.gmra.mxu1 %vm2636_vm4, %v2988_v62 }
 0x475   : > { %4148 = vmatpush.xpose.msk.msrb.mxu1 %vm2636_vm4, %v3049_v41  ;;  %4138 = vmatpush.xpose.msk.msrb.mxu0 %vm2636_vm4, %v3041_v44  ;;  %v2535_v27 = vpop.f32.mrf.mxu1 }
 0x476   : > { %2584 = vrot.lane.b32.xlu0 %v2535_v27, %s4214_s23 }
 0x477   : > { %4144 = vmatpush.xpose.msk.msrb.mxu2 %vm2636_vm4, %v3044_v18 }
 0x479   : > { %4139 = vmatpush.xpose.msk.msrb.mxu0 %vm2636_vm4, %v3040_v45 }
 0x47a   : > { %v2811_v61 = vpop.permute.xlu1 %2810  ;;  %v3039_v22 = vld [vmem:[#allocation4 + $0x168] sm:$0xff] }
 0x47b   : > { %v2877_v19 = vpop.permute.xlu2 %2876  ;;  %2846 = vst.msk [vmem:[#allocation4 + $0x188] sm:$0xff] %vm2636_vm4, %v2811_v61  ;;  %v2943_v46 = vpop.permute.xlu0 %2942  ;;  %v3056_v58 = vld [vmem:[#allocation4 + $0x1f0] sm:$0xff] }
 0x47c   : > { %2911 = vst.msk [vmem:[#allocation4 + $0x1b0] sm:$0xff] %vm2636_vm4, %v2877_v19 }
 0x47d   : > { %2976 = vst.msk [vmem:[#allocation4 + $0x1d8] sm:$0xff] %vm2636_vm4, %v2943_v46  ;;  %4140 = vmatpush.xpose.msk.msrb.mxu0 %vm2636_vm4, %v3039_v22 }
 0x481   : > { %4141 = vmatpush.xpose.msk.msrb.mxu0 %vm2636_vm4, %v3038_v28 }
 0x482   : > { %v3043_v48 = vld [vmem:[#allocation4 + $0x188] sm:$0xff] }
 0x483   : > { %v2817_v6 = vpop.permute.xlu1 %2816  ;;  %v2815_v47 = vpop.permute.xlu2 %2814  ;;  %4145 = vmatpush.xpose.msk.msrb.mxu2 %vm2636_vm4, %v3043_v48  ;;  %v3048_v51 = vld [vmem:[#allocation4 + $0x1b0] sm:$0xff] }
 0x484   : > { %2849 = vst.msk [vmem:[#allocation4 + $0x1e8] sm:$0xff] %vm2636_vm4, %v2817_v6  ;;  %v2879_v50 = vpop.permute.xlu0 %2878  ;;  %4149 = vmatpush.xpose.msk.msrb.mxu1 %vm2636_vm4, %v3048_v51  ;;  %v3053_v52 = vld [vmem:[#allocation4 + $0x1d8] sm:$0xff]  ;;  %4142 = vmatmul.msk.f32.vlgmr.msrb.gmra.mxu0 %vm2636_vm4, %v2989_v25 }
 0x485   : > { %2848 = vst.msk [vmem:[#allocation4 + $0x1c8] sm:$0xff] %vm2636_vm4, %v2815_v47  ;;  %4153 = vmatpush.xpose.msk.msra.mxu0 %vm2636_vm4, %v3053_v52 }
 0x486   : > { %2912 = vst.msk [vmem:[#allocation4 + $0x1d0] sm:$0xff] %vm2636_vm4, %v2879_v50 }
 0x487   : > { %4146 = vmatpush.xpose.msk.msrb.mxu2 %vm2636_vm4, %v3042_v53 }
 0x48a   : > { %4147 = vmatmul.msk.f32.vlgmr.msrb.gmra.mxu2 %vm2636_vm4, %v2990_v55 }
 0x48b   : > { %4158 = vmatpush.xpose.msk.msra.mxu2 %vm2636_vm4, %v3057_v54  ;;  %v2813_v56 = vpop.permute.xlu1 %2812  ;;  %v2559_v57 = vpop.permute.xlu2 %2558  ;;  %v3055_v60 = vld [vmem:[#allocation4 + $0x1e8] sm:$0xff] }
 0x48c   : > { %2847 = vst.msk [vmem:[#allocation4 + $0x1a8] sm:$0xff] %vm2636_vm4, %v2813_v56  ;;  %v2555_v14 = vpop.permute.xlu0 %2554  ;;  %v3051_v63 = vld [vmem:[#allocation4 + $0x1c8] sm:$0xff] }
 0x48d   : > { %2605 = vst.msk [vmem:[%s4488_s27 + $0x10] sm:$0xff] %vm2602_vm5, %v2559_v57  ;;  %v3052_v59 = vld [vmem:[#allocation4 + $0x1d0] sm:$0xff] }
 0x48e   : > { %2603 = vst.msk [vmem:[%s4488_s27] sm:$0xff] %vm2602_vm5, %v2555_v14  ;;  %4154 = vmatpush.xpose.msk.msra.mxu0 %vm2636_vm4, %v3052_v59 }
 0x48f   : > { %4159 = vmatpush.xpose.msk.msra.mxu2 %vm2636_vm4, %v3056_v58 }
 0x492   : > { %4155 = vmatpush.xpose.msk.msra.mxu0 %vm2636_vm4, %v3051_v63 }
 0x493   : > { %4160 = vmatpush.xpose.msk.msra.mxu2 %vm2636_vm4, %v3055_v60  ;;  %v2557_v0 = vpop.permute.xlu1 %2556  ;;  %v3047_v1 = vld [vmem:[#allocation4 + $0x1a8] sm:$0xff] }
 0x494   : > { %2604 = vst.msk [vmem:[%s4488_s27 + $0x8] sm:$0xff] %vm2602_vm5, %v2557_v0  ;;  %4150 = vmatpush.xpose.msk.msrb.mxu1 %vm2636_vm4, %v3047_v1 }
 0x496   : > { %4156 = vmatpush.xpose.msk.msra.mxu0 %vm2636_vm4, %v3050_v5 }
 0x497   : > { %4161 = vmatpush.xpose.msk.msra.mxu2 %vm2636_vm4, %v3054_v3 }
 0x498   : > { %4151 = vmatpush.xpose.msk.msrb.mxu1 %vm2636_vm4, %v3046_v9 }
 0x499   : > { %4157 = vmatmul.msk.f32.vlgmr.msra.gmra.mxu0 %vm2636_vm4, %v2992_v8 }
 0x49a   : > { %4162 = vmatmul.msk.f32.vlgmr.msra.gmra.mxu2 %vm2636_vm4, %v2993_v7 }
 0x49b   : > { %v2563_v11 = vpop.permute.xlu1 %2562  ;;  %4152 = vmatmul.msk.f32.vlgmr.msrb.gmra.mxu1 %vm2636_vm4, %v2991_v10 }
 0x49c   : > { %2607 = vst.msk [vmem:[%s4488_s27 + $0x20] sm:$0xff] %vm2602_vm5, %v2563_v11 }
 0x4a3   : > { %v2569_v15 = vpop.permute.xlu1 %2568 }
 0x4a4   : > { %2610 = vst.msk [vmem:[%s4488_s27 + $0x38] sm:$0xff] %vm2602_vm5, %v2569_v15 }
 0x4a7   : > { %v3090_v26 = vpop.f32.mrf.mxu0 }
 0x4a8   : > { %3634 = vrot.lane.b32.xlu1 %v3090_v26, %s4215_s20 }
 0x4aa   : > { %v3125_v30 = vpop.f32.mrf.mxu1 }
 0x4ab   : > { %v2575_v21 = vpop.permute.xlu1 %2574  ;;  %3636 = vrot.lane.b32.xlu2 %v3125_v30, %s4215_s20 }
 0x4ac   : > { %2613 = vst.msk [vmem:[%s4488_s27 + $0x50] sm:$0xff] %vm2602_vm5, %v2575_v21 }
 0x4af   : > { %v2565_v36 = vpop.permute.xlu2 %2564 }
 0x4b0   : > { %2608 = vst.msk [vmem:[%s4488_s27 + $0x28] sm:$0xff] %vm2602_vm5, %v2565_v36 }
 0x4b3   : > { %v2581_v34 = vpop.permute.xlu1 %2580 }
 0x4b4   : > { %2616 = vst.msk [vmem:[%s4488_s27 + $0x68] sm:$0xff] %vm2602_vm5, %v2581_v34 }
 0x4b8   : > { %v2571_v39 = vpop.permute.xlu2 %2570 }
 0x4b9   : > { %2611 = vst.msk [vmem:[%s4488_s27 + $0x40] sm:$0xff] %vm2602_vm5, %v2571_v39 }
 0x4ba   : > { %v3160_v29 = vpop.f32.mrf.mxu0 }
 0x4bb   : > { %3638 = vrot.lane.b32.xlu0 %v3160_v29, %s4215_s20 }
 0x4c0   : > { %v2577_v40 = vpop.permute.xlu2 %2576 }
 0x4c1   : > { %v3230_v37 = vpop.f32.mrf.mxu1  ;;  %2614 = vst.msk [vmem:[%s4488_s27 + $0x58] sm:$0xff] %vm2602_vm5, %v2577_v40 }
 0x4c2   : > { %3642 = vrot.lane.b32.xlu2 %v3230_v37, %s4215_s20 }
 0x4c5   : > { %v3195_v31 = vpop.f32.mrf.mxu2 }
 0x4c6   : > { %3640 = vrot.lane.b32.xlu1 %v3195_v31, %s4215_s20 }
 0x4c8   : > { %v2583_v41 = vpop.permute.xlu2 %2582  ;;  %v2561_v42 = vpop.permute.xlu0 %2560 }
 0x4c9   : > { %2617 = vst.msk [vmem:[%s4488_s27 + $0x70] sm:$0xff] %vm2602_vm5, %v2583_v41 }
 0x4ca   : > { %2606 = vst.msk [vmem:[%s4488_s27 + $0x18] sm:$0xff] %vm2602_vm5, %v2561_v42 }
 0x4d0   : > { %v2567_v44 = vpop.permute.xlu0 %2566 }
 0x4d1   : > { %v3265_v32 = vpop.f32.mrf.mxu0  ;;  %2609 = vst.msk [vmem:[%s4488_s27 + $0x30] sm:$0xff] %vm2602_vm5, %v2567_v44 }
 0x4d2   : > { %3644 = vrot.lane.b32.xlu0 %v3265_v32, %s4215_s20 }
 0x4d8   : > { %v2573_v61 = vpop.permute.xlu0 %2572 }
 0x4d9   : > { %v3335_v16 = vpop.f32.mrf.mxu1  ;;  %2612 = vst.msk [vmem:[%s4488_s27 + $0x48] sm:$0xff] %vm2602_vm5, %v2573_v61 }
 0x4da   : > { %3648 = vrot.lane.b32.xlu2 %v3335_v16, %s4215_s20 }
 0x4dd   : > { %v3300_v33 = vpop.f32.mrf.mxu2 }
 0x4de   : > { %3646 = vrot.lane.b32.xlu1 %v3300_v33, %s4215_s20 }
 0x4e0   : > { %v2579_v28 = vpop.permute.xlu0 %2578 }
 0x4e1   : > { %2615 = vst.msk [vmem:[%s4488_s27 + $0x60] sm:$0xff] %vm2602_vm5, %v2579_v28 }
 0x4e8   : > { %v2585_v6 = vpop.permute.xlu0 %2584 }
 0x4e9   : > { %v3370_v35 = vpop.f32.mrf.mxu0  ;;  %2618 = vst.msk [vmem:[%s4488_s27 + $0x78] sm:$0xff] %vm2602_vm5, %v2585_v6 }
 0x4ea   : > { %3650 = vrot.lane.b32.xlu0 %v3370_v35, %s4215_s20 }
 0x4f1   : > { %v3440_v43 = vpop.f32.mrf.mxu1 }
 0x4f2   : > { %3654 = vrot.lane.b32.xlu2 %v3440_v43, %s4215_s20 }
 0x4f5   : > { %v3405_v38 = vpop.f32.mrf.mxu2 }
 0x4f6   : > { %3652 = vrot.lane.b32.xlu1 %v3405_v38, %s4215_s20 }
 0x501   : > { %v3475_v49 = vpop.f32.mrf.mxu0 }
 0x502   : > { %3656 = vrot.lane.b32.xlu0 %v3475_v49, %s4215_s20 }
 0x505   : > { %v3637_v22 = vpop.permute.xlu2 %3636 }
 0x506   : > { %3684 = vst.msk [vmem:[%s4488_s27 + $0x8] sm:$0xff] %vm3682_vm6, %v3637_v22 }
 0x50d   : > { %v3510_v18 = vpop.f32.mrf.mxu2 }
 0x50e   : > { %3658 = vrot.lane.b32.xlu1 %v3510_v18, %s4215_s20 }
 0x516   : > { %v3580_v45 = vpop.f32.mrf.mxu0 }
 0x517   : > { %3662 = vrot.lane.b32.xlu0 %v3580_v45, %s4215_s20 }
 0x518   : > { %v3545_v19 = vpop.f32.mrf.mxu1 }
 0x519   : > { %3660 = vrot.lane.b32.xlu2 %v3545_v19, %s4215_s20 }
 0x51a   : > { %v3635_v25 = vpop.permute.xlu1 %3634 }
 0x51b   : > { %3683 = vst.msk [vmem:[%s4488_s27] sm:$0xff] %vm3682_vm6, %v3635_v25 }
 0x51c   : > { %v3643_v51 = vpop.permute.xlu2 %3642 }
 0x51d   : > { %v3615_v46 = vpop.f32.mrf.mxu2  ;;  %3687 = vst.msk [vmem:[%s4488_s27 + $0x20] sm:$0xff] %vm3682_vm6, %v3643_v51 }
 0x51e   : > { %3664 = vrot.lane.b32.xlu1 %v3615_v46, %s4215_s20 }
 0x52d   : > { %v3639_v47 = vpop.permute.xlu0 %3638 }
 0x52e   : > { %3685 = vst.msk [vmem:[%s4488_s27 + $0x10] sm:$0xff] %vm3682_vm6, %v3639_v47 }
 0x534   : > { %v3649_v53 = vpop.permute.xlu2 %3648 }
 0x535   : > { %3690 = vst.msk [vmem:[%s4488_s27 + $0x38] sm:$0xff] %vm3682_vm6, %v3649_v53 }
 0x538   : > { %v3641_v48 = vpop.permute.xlu1 %3640 }
 0x539   : > { %3686 = vst.msk [vmem:[%s4488_s27 + $0x18] sm:$0xff] %vm3682_vm6, %v3641_v48 }
 0x544   : > { %v3645_v50 = vpop.permute.xlu0 %3644 }
 0x545   : > { %3688 = vst.msk [vmem:[%s4488_s27 + $0x28] sm:$0xff] %vm3682_vm6, %v3645_v50 }
 0x54c   : > { %v3655_v55 = vpop.permute.xlu2 %3654 }
 0x54d   : > { %3693 = vst.msk [vmem:[%s4488_s27 + $0x50] sm:$0xff] %vm3682_vm6, %v3655_v55 }
 0x550   : > { %v3647_v52 = vpop.permute.xlu1 %3646 }
 0x551   : > { %3689 = vst.msk [vmem:[%s4488_s27 + $0x30] sm:$0xff] %vm3682_vm6, %v3647_v52 }
 0x55c   : > { %v3651_v54 = vpop.permute.xlu0 %3650 }
 0x55d   : > { %3691 = vst.msk [vmem:[%s4488_s27 + $0x40] sm:$0xff] %vm3682_vm6, %v3651_v54 }
 0x568   : > { %v3653_v56 = vpop.permute.xlu1 %3652 }
 0x569   : > { %3692 = vst.msk [vmem:[%s4488_s27 + $0x48] sm:$0xff] %vm3682_vm6, %v3653_v56 }
 0x573   : > { %v3661_v57 = vpop.permute.xlu2 %3660 }
 0x574   : > { %3696 = vst.msk [vmem:[%s4488_s27 + $0x68] sm:$0xff] %vm3682_vm6, %v3661_v57  ;;  %v3657_v14 = vpop.permute.xlu0 %3656 }
 0x575   : > { %3694 = vst.msk [vmem:[%s4488_s27 + $0x58] sm:$0xff] %vm3682_vm6, %v3657_v14 }
 0x580   : > { %v3659_v58 = vpop.permute.xlu1 %3658 }
 0x581   : > { %3695 = vst.msk [vmem:[%s4488_s27 + $0x60] sm:$0xff] %vm3682_vm6, %v3659_v58 }
 0x589   : > { %v3663_v59 = vpop.permute.xlu0 %3662 }
 0x58a   : > { %3697 = vst.msk [vmem:[%s4488_s27 + $0x70] sm:$0xff] %vm3682_vm6, %v3663_v59 }
 0x590   : > { %v3665_v60 = vpop.permute.xlu1 %3664 }
 0x591   : > { %3698 = vst.msk [vmem:[%s4488_s27 + $0x78] sm:$0xff] %vm3682_vm6, %v3665_v60 }
 0x592 PF: > { %s28_s17 = sadd.s32 1, %s4204_s17  }
 0x593   : > { %p25_p7 = scmp.ge.s32.totalorder %s28_s17, 5  }
 0x595   :  { %27 = sbr.rel (!%p25_p7) target bundleno = 7 (0x7), region = 110 }

</bundles_post_ra>
